<compile_context>
chip_gen: v6e
topology: v6e:2x2x1
jax: 0.10.0
libtpu: 0.0.40
codegen_flags: <defaults>
</compile_context>

<pallas_src>
import jax
import jax.numpy as jnp
from jax.experimental import pallas as pl
from jax.experimental.pallas import tpu as pltpu

# ----------------------------- model config ---------------------------------
NODE_TYPES = 7          # len(node_types) in the reference module
EMB_DIM = 9             # small stand-in for graphcodebert hidden_size (768)
IN_CH = NODE_TYPES + EMB_DIM   # 16
HIDDEN = 8              # hidden_channels
OUT_CH = 4              # out_channels
HEADS = 4

N_NODES = 16
N_GRAPHS = 3
N_EDGES = 40


# --------------------------- in-kernel layer ---------------------------------
def _gat_layer(x, adj, w, a_src_mat, a_dst_mat, bias, *, heads, out_ch,
               apply_relu):
    """One GATConv layer (PyG semantics, concat=True, eval mode) on values.

    x:[N,Fin]  w:[Fin,H*C]  a_src_mat/a_dst_mat:[H*C,H]  bias:[1,H*C]  adj:[N,N]
    returns [N, H*C]
    """
    # Linear transform of all nodes (MXU): [N, heads*out_ch]
    h = jnp.dot(x, w, preferred_element_type=jnp.float32)

    # All-head attention coefficients with two small MXU matmuls:
    #   alpha_src_rows[hd, j] = a_src[hd] . h_j(head hd)    -> row layout [H, N]
    #   alpha_dst_cols[i, hd] = a_dst[hd] . h_i(head hd)    -> col layout [N, H]
    alpha_src_rows = jax.lax.dot_general(
        a_src_mat, h, (((0,), (1,)), ((), ())),
        preferred_element_type=jnp.float32)
    alpha_dst_cols = jnp.dot(h, a_dst_mat, preferred_element_type=jnp.float32)

    outs = []
    for hd in range(heads):
        # e[i, j] = LeakyReLU(alpha_dst[target=i] + alpha_src[source=j], 0.2)
        e = alpha_dst_cols[:, hd:hd + 1] + alpha_src_rows[hd:hd + 1, :]  # [N,N]
        e = jnp.where(e > 0, e, 0.2 * e)
        e = jnp.where(adj > 0, e, -1e30)        # mask non-edges (f32 safe)

        # softmax over source nodes j (per target i, per head)
        m = jnp.max(e, axis=-1, keepdims=True)
        p = jnp.exp(e - m)
        att = p / jnp.sum(p, axis=-1, keepdims=True)

        # weighted aggregation of neighbour features (MXU)
        outs.append(jnp.dot(att, h[:, hd * out_ch:(hd + 1) * out_ch],
                            preferred_element_type=jnp.float32))

    out = jnp.concatenate(outs, axis=-1) if heads > 1 else outs[0]
    out = out + bias                             # post-concat bias (PyG)
    if apply_relu:
        out = jnp.maximum(out, 0.0)
    return out


def _gat_forward_kernel(x_ref, adj_ref, pmat_ref,
                        w1_ref, as1_ref, ad1_ref, b1_ref,
                        w2_ref, as2_ref, ad2_ref, b2_ref,
                        w3_ref, as3_ref, ad3_ref, b3_ref,
                        out_ref):
    adj = adj_ref[...]

    h = _gat_layer(x_ref[...], adj, w1_ref[...], as1_ref[...], ad1_ref[...],
                   b1_ref[...], heads=HEADS, out_ch=HIDDEN, apply_relu=True)
    h = _gat_layer(h, adj, w2_ref[...], as2_ref[...], ad2_ref[...],
                   b2_ref[...], heads=HEADS, out_ch=HIDDEN, apply_relu=True)
    h = _gat_layer(h, adj, w3_ref[...], as3_ref[...], ad3_ref[...],
                   b3_ref[...], heads=1, out_ch=OUT_CH, apply_relu=False)

    # global_mean_pool: the only HBM write of the whole forward.
    out_ref[...] = jnp.dot(pmat_ref[...], h, preferred_element_type=jnp.float32)


# ------------------------------ wrapper ---------------------------------------
def _head_block_matrix(a, heads, out_ch):
    """Expand per-head attention vector a:[H, C] into block-diag [H*C, H]."""
    eye = jnp.eye(heads, dtype=a.dtype)                  # [H, H]
    m = eye[:, None, :] * a[:, :, None]                  # [H, C, H]
    return m.reshape(heads * out_ch, heads)


def gat_forward(params, x, adj, pmat):
    layer_cfg = (("conv1", HEADS, HIDDEN),
                 ("conv2", HEADS, HIDDEN),
                 ("conv3", 1, OUT_CH))
    flat = []
    for name, heads, out_ch in layer_cfg:
        w, a_src, a_dst, bias = params[name]
        flat += [w,
                 _head_block_matrix(a_src, heads, out_ch),
                 _head_block_matrix(a_dst, heads, out_ch),
                 bias]

    vmem = pl.BlockSpec(memory_space=pltpu.MemorySpace.VMEM)
    return pl.pallas_call(
        _gat_forward_kernel,
        out_shape=jax.ShapeDtypeStruct((pmat.shape[0], OUT_CH), jnp.float32),
        in_specs=[vmem] * (3 + len(flat)),
        out_specs=vmem,
    )(x, adj, pmat, *flat)


# --------------------------- parameter init ----------------------------------
def _glorot(key, shape):
    fan_in, fan_out = shape[0], shape[1]
    lim = (6.0 / (fan_in + fan_out)) ** 0.5
    return jax.random.uniform(key, shape, jnp.float32, -lim, lim)


def init_gatconv(key, in_ch, out_ch, heads):
    k1, k2, k3 = jax.random.split(key, 3)
    w = _glorot(k1, (in_ch, heads * out_ch))       # lin weight (no lin bias)
    a_src = _glorot(k2, (heads, out_ch))           # att_src, heads on sublanes
    a_dst = _glorot(k3, (heads, out_ch))           # att_dst
    bias = jnp.zeros((1, heads * out_ch), jnp.float32)
    return (w, a_src, a_dst, bias)


# --------------------------------- main ---------------------------------------
if __name__ == "__main__":
    key = jax.random.PRNGKey(0)
    kx, ke1, ke2, kp1, kp2, kp3 = jax.random.split(key, 6)

    # Synthetic graph batch: 3 graphs, 16 nodes total, 40 random directed edges.
    x = jax.random.normal(kx, (N_NODES, IN_CH), jnp.float32)
    src = jax.random.randint(ke1, (N_EDGES,), 0, N_NODES)
    dst = jax.random.randint(ke2, (N_EDGES,), 0, N_NODES)
    edge_index = jnp.stack([src, dst])                     # [2, E], PyG layout
    batch = jnp.array([0] * 6 + [1] * 5 + [2] * 5, jnp.int32)

    # Dense adjacency mask adj[target, source], with self-loops (PyG default).
    adj = jnp.zeros((N_NODES, N_NODES), jnp.float32)
    adj = adj.at[edge_index[1], edge_index[0]].set(1.0)
    adj = jnp.maximum(adj, jnp.eye(N_NODES, dtype=jnp.float32))

    # Normalized pooling matrix for global_mean_pool: pmat[g, n] = 1/|V_g|.
    onehot = (batch[None, :] == jnp.arange(N_GRAPHS)[:, None]).astype(
        jnp.float32)
    pmat = onehot / onehot.sum(axis=1, keepdims=True)

    params = {
        "conv1": init_gatconv(kp1, IN_CH, HIDDEN, HEADS),
        "conv2": init_gatconv(kp2, HIDDEN * HEADS, HIDDEN, HEADS),
        "conv3": init_gatconv(kp3, HIDDEN * HEADS, OUT_CH, 1),
    }

    out = gat_forward(params, x, adj, pmat)
    out = jax.block_until_ready(out)

    assert out.shape == (N_GRAPHS, OUT_CH), out.shape
    assert bool(jnp.all(jnp.isfinite(out)))
    print("KERNEL_OK")
</pallas_src>

<mosaic_0001>
module attributes {stable_mosaic.version = 11 : i64} {
  func.func @_gat_forward_kernel(%arg0: memref<16x16xf32, #tpu.memory_space<vmem>>, %arg1: memref<16x16xf32, #tpu.memory_space<vmem>>, %arg2: memref<3x16xf32, #tpu.memory_space<vmem>>, %arg3: memref<16x32xf32, #tpu.memory_space<vmem>>, %arg4: memref<32x4xf32, #tpu.memory_space<vmem>>, %arg5: memref<32x4xf32, #tpu.memory_space<vmem>>, %arg6: memref<1x32xf32, #tpu.memory_space<vmem>>, %arg7: memref<32x32xf32, #tpu.memory_space<vmem>>, %arg8: memref<32x4xf32, #tpu.memory_space<vmem>>, %arg9: memref<32x4xf32, #tpu.memory_space<vmem>>, %arg10: memref<1x32xf32, #tpu.memory_space<vmem>>, %arg11: memref<32x4xf32, #tpu.memory_space<vmem>>, %arg12: memref<4x1xf32, #tpu.memory_space<vmem>>, %arg13: memref<4x1xf32, #tpu.memory_space<vmem>>, %arg14: memref<1x4xf32, #tpu.memory_space<vmem>>, %arg15: memref<3x4xf32, #tpu.memory_space<vmem>>) attributes {dimension_semantics = [], scalar_prefetch = 0 : i64, scratch_operands = 0 : i64, tpu.core_type = #tpu.core_type<tc>} {
    %c0 = arith.constant 0 : index
    %c0_0 = arith.constant 0 : index
    %0 = vector.load %arg1[%c0, %c0_0] : memref<16x16xf32, #tpu.memory_space<vmem>>, vector<16x16xf32>
    %c0_1 = arith.constant 0 : index
    %c0_2 = arith.constant 0 : index
    %1 = vector.load %arg0[%c0_1, %c0_2] : memref<16x16xf32, #tpu.memory_space<vmem>>, vector<16x16xf32>
    %c0_3 = arith.constant 0 : index
    %c0_4 = arith.constant 0 : index
    %2 = vector.load %arg3[%c0_3, %c0_4] : memref<16x32xf32, #tpu.memory_space<vmem>>, vector<16x32xf32>
    %c0_5 = arith.constant 0 : index
    %c0_6 = arith.constant 0 : index
    %3 = vector.load %arg4[%c0_5, %c0_6] : memref<32x4xf32, #tpu.memory_space<vmem>>, vector<32x4xf32>
    %c0_7 = arith.constant 0 : index
    %c0_8 = arith.constant 0 : index
    %4 = vector.load %arg5[%c0_7, %c0_8] : memref<32x4xf32, #tpu.memory_space<vmem>>, vector<32x4xf32>
    %c0_9 = arith.constant 0 : index
    %c0_10 = arith.constant 0 : index
    %5 = vector.load %arg6[%c0_9, %c0_10] : memref<1x32xf32, #tpu.memory_space<vmem>>, vector<1x32xf32>
    %cst = arith.constant dense<0.000000e+00> : vector<16x32xf32>
    %6 = tpu.matmul %1, %2, %cst {dimension_numbers = #tpu.dot_dimension_numbers<[1], [0], [0], [1], [0, 0, 1, 1], [], []>} : vector<16x16xf32>, vector<16x32xf32>, vector<16x32xf32> -> vector<16x32xf32>
    %cst_11 = arith.constant dense<0.000000e+00> : vector<4x16xf32>
    %7 = tpu.matmul %3, %6, %cst_11 {dimension_numbers = #tpu.dot_dimension_numbers<[0], [1], [1], [0], [0, 1, 1, 0], [], []>} : vector<32x4xf32>, vector<16x32xf32>, vector<4x16xf32> -> vector<4x16xf32>
    %cst_12 = arith.constant dense<0.000000e+00> : vector<16x4xf32>
    %8 = tpu.matmul %6, %4, %cst_12 {dimension_numbers = #tpu.dot_dimension_numbers<[1], [0], [0], [1], [0, 0, 1, 1], [], []>} : vector<16x32xf32>, vector<32x4xf32>, vector<16x4xf32> -> vector<16x4xf32>
    %9 = vector.extract_strided_slice %8 {offsets = [0, 0], sizes = [16, 1], strides = [1, 1]} : vector<16x4xf32> to vector<16x1xf32>
    %10 = vector.extract_strided_slice %7 {offsets = [0, 0], sizes = [1, 16], strides = [1, 1]} : vector<4x16xf32> to vector<1x16xf32>
    %11 = vector.broadcast %9 : vector<16x1xf32> to vector<16x16xf32>
    %12 = vector.broadcast %10 : vector<1x16xf32> to vector<16x16xf32>
    %13 = arith.addf %11, %12 : vector<16x16xf32>
    %cst_13 = arith.constant 0.000000e+00 : f32
    %14 = vector.broadcast %cst_13 : f32 to vector<16x16xf32>
    %15 = arith.cmpf ogt, %13, %14 : vector<16x16xf32>
    %cst_14 = arith.constant 2.000000e-01 : f32
    %16 = vector.broadcast %cst_14 : f32 to vector<16x16xf32>
    %17 = arith.mulf %16, %13 : vector<16x16xf32>
    %18 = arith.select %15, %13, %17 : vector<16x16xi1>, vector<16x16xf32>
    %cst_15 = arith.constant 0.000000e+00 : f32
    %19 = vector.broadcast %cst_15 : f32 to vector<16x16xf32>
    %20 = arith.cmpf ogt, %0, %19 : vector<16x16xf32>
    %cst_16 = arith.constant -1.000000e+30 : f32
    %21 = vector.broadcast %cst_16 : f32 to vector<16x16xf32>
    %22 = arith.select %20, %18, %21 : vector<16x16xi1>, vector<16x16xf32>
    %cst_17 = arith.constant dense<0xFF800000> : vector<16xf32>
    %23 = vector.multi_reduction <maximumf>, %22, %cst_17 [1] : vector<16x16xf32> to vector<16xf32>
    %24 = vector.shape_cast %23 : vector<16xf32> to vector<16x1xf32>
    %25 = vector.broadcast %24 : vector<16x1xf32> to vector<16x16xf32>
    %26 = arith.subf %22, %25 : vector<16x16xf32>
    %27 = math.exp %26 : vector<16x16xf32>
    %cst_18 = arith.constant dense<0.000000e+00> : vector<16xf32>
    %28 = vector.multi_reduction <add>, %27, %cst_18 [1] : vector<16x16xf32> to vector<16xf32>
    %29 = vector.shape_cast %28 : vector<16xf32> to vector<16x1xf32>
    %30 = vector.broadcast %29 : vector<16x1xf32> to vector<16x16xf32>
    %31 = arith.divf %27, %30 : vector<16x16xf32>
    %32 = vector.extract_strided_slice %6 {offsets = [0, 0], sizes = [16, 8], strides = [1, 1]} : vector<16x32xf32> to vector<16x8xf32>
    %cst_19 = arith.constant dense<0.000000e+00> : vector<16x8xf32>
    %33 = tpu.matmul %31, %32, %cst_19 {dimension_numbers = #tpu.dot_dimension_numbers<[1], [0], [0], [1], [0, 0, 1, 1], [], []>} : vector<16x16xf32>, vector<16x8xf32>, vector<16x8xf32> -> vector<16x8xf32>
    %34 = vector.extract_strided_slice %8 {offsets = [0, 1], sizes = [16, 1], strides = [1, 1]} : vector<16x4xf32> to vector<16x1xf32>
    %35 = vector.extract_strided_slice %7 {offsets = [1, 0], sizes = [1, 16], strides = [1, 1]} : vector<4x16xf32> to vector<1x16xf32>
    %36 = vector.broadcast %34 : vector<16x1xf32> to vector<16x16xf32>
    %37 = vector.broadcast %35 : vector<1x16xf32> to vector<16x16xf32>
    %38 = arith.addf %36, %37 : vector<16x16xf32>
    %cst_20 = arith.constant 0.000000e+00 : f32
    %39 = vector.broadcast %cst_20 : f32 to vector<16x16xf32>
    %40 = arith.cmpf ogt, %38, %39 : vector<16x16xf32>
    %cst_21 = arith.constant 2.000000e-01 : f32
    %41 = vector.broadcast %cst_21 : f32 to vector<16x16xf32>
    %42 = arith.mulf %41, %38 : vector<16x16xf32>
    %43 = arith.select %40, %38, %42 : vector<16x16xi1>, vector<16x16xf32>
    %cst_22 = arith.constant 0.000000e+00 : f32
    %44 = vector.broadcast %cst_22 : f32 to vector<16x16xf32>
    %45 = arith.cmpf ogt, %0, %44 : vector<16x16xf32>
    %cst_23 = arith.constant -1.000000e+30 : f32
    %46 = vector.broadcast %cst_23 : f32 to vector<16x16xf32>
    %47 = arith.select %45, %43, %46 : vector<16x16xi1>, vector<16x16xf32>
    %cst_24 = arith.constant dense<0xFF800000> : vector<16xf32>
    %48 = vector.multi_reduction <maximumf>, %47, %cst_24 [1] : vector<16x16xf32> to vector<16xf32>
    %49 = vector.shape_cast %48 : vector<16xf32> to vector<16x1xf32>
    %50 = vector.broadcast %49 : vector<16x1xf32> to vector<16x16xf32>
    %51 = arith.subf %47, %50 : vector<16x16xf32>
    %52 = math.exp %51 : vector<16x16xf32>
    %cst_25 = arith.constant dense<0.000000e+00> : vector<16xf32>
    %53 = vector.multi_reduction <add>, %52, %cst_25 [1] : vector<16x16xf32> to vector<16xf32>
    %54 = vector.shape_cast %53 : vector<16xf32> to vector<16x1xf32>
    %55 = vector.broadcast %54 : vector<16x1xf32> to vector<16x16xf32>
    %56 = arith.divf %52, %55 : vector<16x16xf32>
    %57 = vector.extract_strided_slice %6 {offsets = [0, 8], sizes = [16, 8], strides = [1, 1]} : vector<16x32xf32> to vector<16x8xf32>
    %cst_26 = arith.constant dense<0.000000e+00> : vector<16x8xf32>
    %58 = tpu.matmul %56, %57, %cst_26 {dimension_numbers = #tpu.dot_dimension_numbers<[1], [0], [0], [1], [0, 0, 1, 1], [], []>} : vector<16x16xf32>, vector<16x8xf32>, vector<16x8xf32> -> vector<16x8xf32>
    %59 = vector.extract_strided_slice %8 {offsets = [0, 2], sizes = [16, 1], strides = [1, 1]} : vector<16x4xf32> to vector<16x1xf32>
    %60 = vector.extract_strided_slice %7 {offsets = [2, 0], sizes = [1, 16], strides = [1, 1]} : vector<4x16xf32> to vector<1x16xf32>
    %61 = vector.broadcast %59 : vector<16x1xf32> to vector<16x16xf32>
    %62 = vector.broadcast %60 : vector<1x16xf32> to vector<16x16xf32>
    %63 = arith.addf %61, %62 : vector<16x16xf32>
    %cst_27 = arith.constant 0.000000e+00 : f32
    %64 = vector.broadcast %cst_27 : f32 to vector<16x16xf32>
    %65 = arith.cmpf ogt, %63, %64 : vector<16x16xf32>
    %cst_28 = arith.constant 2.000000e-01 : f32
    %66 = vector.broadcast %cst_28 : f32 to vector<16x16xf32>
    %67 = arith.mulf %66, %63 : vector<16x16xf32>
    %68 = arith.select %65, %63, %67 : vector<16x16xi1>, vector<16x16xf32>
    %cst_29 = arith.constant 0.000000e+00 : f32
    %69 = vector.broadcast %cst_29 : f32 to vector<16x16xf32>
    %70 = arith.cmpf ogt, %0, %69 : vector<16x16xf32>
    %cst_30 = arith.constant -1.000000e+30 : f32
    %71 = vector.broadcast %cst_30 : f32 to vector<16x16xf32>
    %72 = arith.select %70, %68, %71 : vector<16x16xi1>, vector<16x16xf32>
    %cst_31 = arith.constant dense<0xFF800000> : vector<16xf32>
    %73 = vector.multi_reduction <maximumf>, %72, %cst_31 [1] : vector<16x16xf32> to vector<16xf32>
    %74 = vector.shape_cast %73 : vector<16xf32> to vector<16x1xf32>
    %75 = vector.broadcast %74 : vector<16x1xf32> to vector<16x16xf32>
    %76 = arith.subf %72, %75 : vector<16x16xf32>
    %77 = math.exp %76 : vector<16x16xf32>
    %cst_32 = arith.constant dense<0.000000e+00> : vector<16xf32>
    %78 = vector.multi_reduction <add>, %77, %cst_32 [1] : vector<16x16xf32> to vector<16xf32>
    %79 = vector.shape_cast %78 : vector<16xf32> to vector<16x1xf32>
    %80 = vector.broadcast %79 : vector<16x1xf32> to vector<16x16xf32>
    %81 = arith.divf %77, %80 : vector<16x16xf32>
    %82 = vector.extract_strided_slice %6 {offsets = [0, 16], sizes = [16, 8], strides = [1, 1]} : vector<16x32xf32> to vector<16x8xf32>
    %cst_33 = arith.constant dense<0.000000e+00> : vector<16x8xf32>
    %83 = tpu.matmul %81, %82, %cst_33 {dimension_numbers = #tpu.dot_dimension_numbers<[1], [0], [0], [1], [0, 0, 1, 1], [], []>} : vector<16x16xf32>, vector<16x8xf32>, vector<16x8xf32> -> vector<16x8xf32>
    %84 = vector.extract_strided_slice %8 {offsets = [0, 3], sizes = [16, 1], strides = [1, 1]} : vector<16x4xf32> to vector<16x1xf32>
    %85 = vector.extract_strided_slice %7 {offsets = [3, 0], sizes = [1, 16], strides = [1, 1]} : vector<4x16xf32> to vector<1x16xf32>
    %86 = vector.broadcast %84 : vector<16x1xf32> to vector<16x16xf32>
    %87 = vector.broadcast %85 : vector<1x16xf32> to vector<16x16xf32>
    %88 = arith.addf %86, %87 : vector<16x16xf32>
    %cst_34 = arith.constant 0.000000e+00 : f32
    %89 = vector.broadcast %cst_34 : f32 to vector<16x16xf32>
    %90 = arith.cmpf ogt, %88, %89 : vector<16x16xf32>
    %cst_35 = arith.constant 2.000000e-01 : f32
    %91 = vector.broadcast %cst_35 : f32 to vector<16x16xf32>
    %92 = arith.mulf %91, %88 : vector<16x16xf32>
    %93 = arith.select %90, %88, %92 : vector<16x16xi1>, vector<16x16xf32>
    %cst_36 = arith.constant 0.000000e+00 : f32
    %94 = vector.broadcast %cst_36 : f32 to vector<16x16xf32>
    %95 = arith.cmpf ogt, %0, %94 : vector<16x16xf32>
    %cst_37 = arith.constant -1.000000e+30 : f32
    %96 = vector.broadcast %cst_37 : f32 to vector<16x16xf32>
    %97 = arith.select %95, %93, %96 : vector<16x16xi1>, vector<16x16xf32>
    %cst_38 = arith.constant dense<0xFF800000> : vector<16xf32>
    %98 = vector.multi_reduction <maximumf>, %97, %cst_38 [1] : vector<16x16xf32> to vector<16xf32>
    %99 = vector.shape_cast %98 : vector<16xf32> to vector<16x1xf32>
    %100 = vector.broadcast %99 : vector<16x1xf32> to vector<16x16xf32>
    %101 = arith.subf %97, %100 : vector<16x16xf32>
    %102 = math.exp %101 : vector<16x16xf32>
    %cst_39 = arith.constant dense<0.000000e+00> : vector<16xf32>
    %103 = vector.multi_reduction <add>, %102, %cst_39 [1] : vector<16x16xf32> to vector<16xf32>
    %104 = vector.shape_cast %103 : vector<16xf32> to vector<16x1xf32>
    %105 = vector.broadcast %104 : vector<16x1xf32> to vector<16x16xf32>
    %106 = arith.divf %102, %105 : vector<16x16xf32>
    %107 = vector.extract_strided_slice %6 {offsets = [0, 24], sizes = [16, 8], strides = [1, 1]} : vector<16x32xf32> to vector<16x8xf32>
    %cst_40 = arith.constant dense<0.000000e+00> : vector<16x8xf32>
    %108 = tpu.matmul %106, %107, %cst_40 {dimension_numbers = #tpu.dot_dimension_numbers<[1], [0], [0], [1], [0, 0, 1, 1], [], []>} : vector<16x16xf32>, vector<16x8xf32>, vector<16x8xf32> -> vector<16x8xf32>
    %109 = tpu.concatenate %33, %58, %83, %108 in 1 : vector<16x8xf32>, vector<16x8xf32>, vector<16x8xf32>, vector<16x8xf32> -> vector<16x32xf32>
    %110 = vector.broadcast %5 : vector<1x32xf32> to vector<16x32xf32>
    %111 = arith.addf %109, %110 : vector<16x32xf32>
    %cst_41 = arith.constant 0.000000e+00 : f32
    %112 = vector.broadcast %cst_41 : f32 to vector<16x32xf32>
    %113 = arith.maximumf %111, %112 : vector<16x32xf32>
    %c0_42 = arith.constant 0 : index
    %c0_43 = arith.constant 0 : index
    %114 = vector.load %arg7[%c0_42, %c0_43] : memref<32x32xf32, #tpu.memory_space<vmem>>, vector<32x32xf32>
    %c0_44 = arith.constant 0 : index
    %c0_45 = arith.constant 0 : index
    %115 = vector.load %arg8[%c0_44, %c0_45] : memref<32x4xf32, #tpu.memory_space<vmem>>, vector<32x4xf32>
    %c0_46 = arith.constant 0 : index
    %c0_47 = arith.constant 0 : index
    %116 = vector.load %arg9[%c0_46, %c0_47] : memref<32x4xf32, #tpu.memory_space<vmem>>, vector<32x4xf32>
    %c0_48 = arith.constant 0 : index
    %c0_49 = arith.constant 0 : index
    %117 = vector.load %arg10[%c0_48, %c0_49] : memref<1x32xf32, #tpu.memory_space<vmem>>, vector<1x32xf32>
    %cst_50 = arith.constant dense<0.000000e+00> : vector<16x32xf32>
    %118 = tpu.matmul %113, %114, %cst_50 {dimension_numbers = #tpu.dot_dimension_numbers<[1], [0], [0], [1], [0, 0, 1, 1], [], []>} : vector<16x32xf32>, vector<32x32xf32>, vector<16x32xf32> -> vector<16x32xf32>
    %cst_51 = arith.constant dense<0.000000e+00> : vector<4x16xf32>
    %119 = tpu.matmul %115, %118, %cst_51 {dimension_numbers = #tpu.dot_dimension_numbers<[0], [1], [1], [0], [0, 1, 1, 0], [], []>} : vector<32x4xf32>, vector<16x32xf32>, vector<4x16xf32> -> vector<4x16xf32>
    %cst_52 = arith.constant dense<0.000000e+00> : vector<16x4xf32>
    %120 = tpu.matmul %118, %116, %cst_52 {dimension_numbers = #tpu.dot_dimension_numbers<[1], [0], [0], [1], [0, 0, 1, 1], [], []>} : vector<16x32xf32>, vector<32x4xf32>, vector<16x4xf32> -> vector<16x4xf32>
    %121 = vector.extract_strided_slice %120 {offsets = [0, 0], sizes = [16, 1], strides = [1, 1]} : vector<16x4xf32> to vector<16x1xf32>
    %122 = vector.extract_strided_slice %119 {offsets = [0, 0], sizes = [1, 16], strides = [1, 1]} : vector<4x16xf32> to vector<1x16xf32>
    %123 = vector.broadcast %121 : vector<16x1xf32> to vector<16x16xf32>
    %124 = vector.broadcast %122 : vector<1x16xf32> to vector<16x16xf32>
    %125 = arith.addf %123, %124 : vector<16x16xf32>
    %cst_53 = arith.constant 0.000000e+00 : f32
    %126 = vector.broadcast %cst_53 : f32 to vector<16x16xf32>
    %127 = arith.cmpf ogt, %125, %126 : vector<16x16xf32>
    %cst_54 = arith.constant 2.000000e-01 : f32
    %128 = vector.broadcast %cst_54 : f32 to vector<16x16xf32>
    %129 = arith.mulf %128, %125 : vector<16x16xf32>
    %130 = arith.select %127, %125, %129 : vector<16x16xi1>, vector<16x16xf32>
    %cst_55 = arith.constant 0.000000e+00 : f32
    %131 = vector.broadcast %cst_55 : f32 to vector<16x16xf32>
    %132 = arith.cmpf ogt, %0, %131 : vector<16x16xf32>
    %cst_56 = arith.constant -1.000000e+30 : f32
    %133 = vector.broadcast %cst_56 : f32 to vector<16x16xf32>
    %134 = arith.select %132, %130, %133 : vector<16x16xi1>, vector<16x16xf32>
    %cst_57 = arith.constant dense<0xFF800000> : vector<16xf32>
    %135 = vector.multi_reduction <maximumf>, %134, %cst_57 [1] : vector<16x16xf32> to vector<16xf32>
    %136 = vector.shape_cast %135 : vector<16xf32> to vector<16x1xf32>
    %137 = vector.broadcast %136 : vector<16x1xf32> to vector<16x16xf32>
    %138 = arith.subf %134, %137 : vector<16x16xf32>
    %139 = math.exp %138 : vector<16x16xf32>
    %cst_58 = arith.constant dense<0.000000e+00> : vector<16xf32>
    %140 = vector.multi_reduction <add>, %139, %cst_58 [1] : vector<16x16xf32> to vector<16xf32>
    %141 = vector.shape_cast %140 : vector<16xf32> to vector<16x1xf32>
    %142 = vector.broadcast %141 : vector<16x1xf32> to vector<16x16xf32>
    %143 = arith.divf %139, %142 : vector<16x16xf32>
    %144 = vector.extract_strided_slice %118 {offsets = [0, 0], sizes = [16, 8], strides = [1, 1]} : vector<16x32xf32> to vector<16x8xf32>
    %cst_59 = arith.constant dense<0.000000e+00> : vector<16x8xf32>
    %145 = tpu.matmul %143, %144, %cst_59 {dimension_numbers = #tpu.dot_dimension_numbers<[1], [0], [0], [1], [0, 0, 1, 1], [], []>} : vector<16x16xf32>, vector<16x8xf32>, vector<16x8xf32> -> vector<16x8xf32>
    %146 = vector.extract_strided_slice %120 {offsets = [0, 1], sizes = [16, 1], strides = [1, 1]} : vector<16x4xf32> to vector<16x1xf32>
    %147 = vector.extract_strided_slice %119 {offsets = [1, 0], sizes = [1, 16], strides = [1, 1]} : vector<4x16xf32> to vector<1x16xf32>
    %148 = vector.broadcast %146 : vector<16x1xf32> to vector<16x16xf32>
    %149 = vector.broadcast %147 : vector<1x16xf32> to vector<16x16xf32>
    %150 = arith.addf %148, %149 : vector<16x16xf32>
    %cst_60 = arith.constant 0.000000e+00 : f32
    %151 = vector.broadcast %cst_60 : f32 to vector<16x16xf32>
    %152 = arith.cmpf ogt, %150, %151 : vector<16x16xf32>
    %cst_61 = arith.constant 2.000000e-01 : f32
    %153 = vector.broadcast %cst_61 : f32 to vector<16x16xf32>
    %154 = arith.mulf %153, %150 : vector<16x16xf32>
    %155 = arith.select %152, %150, %154 : vector<16x16xi1>, vector<16x16xf32>
    %cst_62 = arith.constant 0.000000e+00 : f32
    %156 = vector.broadcast %cst_62 : f32 to vector<16x16xf32>
    %157 = arith.cmpf ogt, %0, %156 : vector<16x16xf32>
    %cst_63 = arith.constant -1.000000e+30 : f32
    %158 = vector.broadcast %cst_63 : f32 to vector<16x16xf32>
    %159 = arith.select %157, %155, %158 : vector<16x16xi1>, vector<16x16xf32>
    %cst_64 = arith.constant dense<0xFF800000> : vector<16xf32>
    %160 = vector.multi_reduction <maximumf>, %159, %cst_64 [1] : vector<16x16xf32> to vector<16xf32>
    %161 = vector.shape_cast %160 : vector<16xf32> to vector<16x1xf32>
    %162 = vector.broadcast %161 : vector<16x1xf32> to vector<16x16xf32>
    %163 = arith.subf %159, %162 : vector<16x16xf32>
    %164 = math.exp %163 : vector<16x16xf32>
    %cst_65 = arith.constant dense<0.000000e+00> : vector<16xf32>
    %165 = vector.multi_reduction <add>, %164, %cst_65 [1] : vector<16x16xf32> to vector<16xf32>
    %166 = vector.shape_cast %165 : vector<16xf32> to vector<16x1xf32>
    %167 = vector.broadcast %166 : vector<16x1xf32> to vector<16x16xf32>
    %168 = arith.divf %164, %167 : vector<16x16xf32>
    %169 = vector.extract_strided_slice %118 {offsets = [0, 8], sizes = [16, 8], strides = [1, 1]} : vector<16x32xf32> to vector<16x8xf32>
    %cst_66 = arith.constant dense<0.000000e+00> : vector<16x8xf32>
    %170 = tpu.matmul %168, %169, %cst_66 {dimension_numbers = #tpu.dot_dimension_numbers<[1], [0], [0], [1], [0, 0, 1, 1], [], []>} : vector<16x16xf32>, vector<16x8xf32>, vector<16x8xf32> -> vector<16x8xf32>
    %171 = vector.extract_strided_slice %120 {offsets = [0, 2], sizes = [16, 1], strides = [1, 1]} : vector<16x4xf32> to vector<16x1xf32>
    %172 = vector.extract_strided_slice %119 {offsets = [2, 0], sizes = [1, 16], strides = [1, 1]} : vector<4x16xf32> to vector<1x16xf32>
    %173 = vector.broadcast %171 : vector<16x1xf32> to vector<16x16xf32>
    %174 = vector.broadcast %172 : vector<1x16xf32> to vector<16x16xf32>
    %175 = arith.addf %173, %174 : vector<16x16xf32>
    %cst_67 = arith.constant 0.000000e+00 : f32
    %176 = vector.broadcast %cst_67 : f32 to vector<16x16xf32>
    %177 = arith.cmpf ogt, %175, %176 : vector<16x16xf32>
    %cst_68 = arith.constant 2.000000e-01 : f32
    %178 = vector.broadcast %cst_68 : f32 to vector<16x16xf32>
    %179 = arith.mulf %178, %175 : vector<16x16xf32>
    %180 = arith.select %177, %175, %179 : vector<16x16xi1>, vector<16x16xf32>
    %cst_69 = arith.constant 0.000000e+00 : f32
    %181 = vector.broadcast %cst_69 : f32 to vector<16x16xf32>
    %182 = arith.cmpf ogt, %0, %181 : vector<16x16xf32>
    %cst_70 = arith.constant -1.000000e+30 : f32
    %183 = vector.broadcast %cst_70 : f32 to vector<16x16xf32>
    %184 = arith.select %182, %180, %183 : vector<16x16xi1>, vector<16x16xf32>
    %cst_71 = arith.constant dense<0xFF800000> : vector<16xf32>
    %185 = vector.multi_reduction <maximumf>, %184, %cst_71 [1] : vector<16x16xf32> to vector<16xf32>
    %186 = vector.shape_cast %185 : vector<16xf32> to vector<16x1xf32>
    %187 = vector.broadcast %186 : vector<16x1xf32> to vector<16x16xf32>
    %188 = arith.subf %184, %187 : vector<16x16xf32>
    %189 = math.exp %188 : vector<16x16xf32>
    %cst_72 = arith.constant dense<0.000000e+00> : vector<16xf32>
    %190 = vector.multi_reduction <add>, %189, %cst_72 [1] : vector<16x16xf32> to vector<16xf32>
    %191 = vector.shape_cast %190 : vector<16xf32> to vector<16x1xf32>
    %192 = vector.broadcast %191 : vector<16x1xf32> to vector<16x16xf32>
    %193 = arith.divf %189, %192 : vector<16x16xf32>
    %194 = vector.extract_strided_slice %118 {offsets = [0, 16], sizes = [16, 8], strides = [1, 1]} : vector<16x32xf32> to vector<16x8xf32>
    %cst_73 = arith.constant dense<0.000000e+00> : vector<16x8xf32>
    %195 = tpu.matmul %193, %194, %cst_73 {dimension_numbers = #tpu.dot_dimension_numbers<[1], [0], [0], [1], [0, 0, 1, 1], [], []>} : vector<16x16xf32>, vector<16x8xf32>, vector<16x8xf32> -> vector<16x8xf32>
    %196 = vector.extract_strided_slice %120 {offsets = [0, 3], sizes = [16, 1], strides = [1, 1]} : vector<16x4xf32> to vector<16x1xf32>
    %197 = vector.extract_strided_slice %119 {offsets = [3, 0], sizes = [1, 16], strides = [1, 1]} : vector<4x16xf32> to vector<1x16xf32>
    %198 = vector.broadcast %196 : vector<16x1xf32> to vector<16x16xf32>
    %199 = vector.broadcast %197 : vector<1x16xf32> to vector<16x16xf32>
    %200 = arith.addf %198, %199 : vector<16x16xf32>
    %cst_74 = arith.constant 0.000000e+00 : f32
    %201 = vector.broadcast %cst_74 : f32 to vector<16x16xf32>
    %202 = arith.cmpf ogt, %200, %201 : vector<16x16xf32>
    %cst_75 = arith.constant 2.000000e-01 : f32
    %203 = vector.broadcast %cst_75 : f32 to vector<16x16xf32>
    %204 = arith.mulf %203, %200 : vector<16x16xf32>
    %205 = arith.select %202, %200, %204 : vector<16x16xi1>, vector<16x16xf32>
    %cst_76 = arith.constant 0.000000e+00 : f32
    %206 = vector.broadcast %cst_76 : f32 to vector<16x16xf32>
    %207 = arith.cmpf ogt, %0, %206 : vector<16x16xf32>
    %cst_77 = arith.constant -1.000000e+30 : f32
    %208 = vector.broadcast %cst_77 : f32 to vector<16x16xf32>
    %209 = arith.select %207, %205, %208 : vector<16x16xi1>, vector<16x16xf32>
    %cst_78 = arith.constant dense<0xFF800000> : vector<16xf32>
    %210 = vector.multi_reduction <maximumf>, %209, %cst_78 [1] : vector<16x16xf32> to vector<16xf32>
    %211 = vector.shape_cast %210 : vector<16xf32> to vector<16x1xf32>
    %212 = vector.broadcast %211 : vector<16x1xf32> to vector<16x16xf32>
    %213 = arith.subf %209, %212 : vector<16x16xf32>
    %214 = math.exp %213 : vector<16x16xf32>
    %cst_79 = arith.constant dense<0.000000e+00> : vector<16xf32>
    %215 = vector.multi_reduction <add>, %214, %cst_79 [1] : vector<16x16xf32> to vector<16xf32>
    %216 = vector.shape_cast %215 : vector<16xf32> to vector<16x1xf32>
    %217 = vector.broadcast %216 : vector<16x1xf32> to vector<16x16xf32>
    %218 = arith.divf %214, %217 : vector<16x16xf32>
    %219 = vector.extract_strided_slice %118 {offsets = [0, 24], sizes = [16, 8], strides = [1, 1]} : vector<16x32xf32> to vector<16x8xf32>
    %cst_80 = arith.constant dense<0.000000e+00> : vector<16x8xf32>
    %220 = tpu.matmul %218, %219, %cst_80 {dimension_numbers = #tpu.dot_dimension_numbers<[1], [0], [0], [1], [0, 0, 1, 1], [], []>} : vector<16x16xf32>, vector<16x8xf32>, vector<16x8xf32> -> vector<16x8xf32>
    %221 = tpu.concatenate %145, %170, %195, %220 in 1 : vector<16x8xf32>, vector<16x8xf32>, vector<16x8xf32>, vector<16x8xf32> -> vector<16x32xf32>
    %222 = vector.broadcast %117 : vector<1x32xf32> to vector<16x32xf32>
    %223 = arith.addf %221, %222 : vector<16x32xf32>
    %cst_81 = arith.constant 0.000000e+00 : f32
    %224 = vector.broadcast %cst_81 : f32 to vector<16x32xf32>
    %225 = arith.maximumf %223, %224 : vector<16x32xf32>
    %c0_82 = arith.constant 0 : index
    %c0_83 = arith.constant 0 : index
    %226 = vector.load %arg11[%c0_82, %c0_83] : memref<32x4xf32, #tpu.memory_space<vmem>>, vector<32x4xf32>
    %c0_84 = arith.constant 0 : index
    %c0_85 = arith.constant 0 : index
    %227 = vector.load %arg12[%c0_84, %c0_85] : memref<4x1xf32, #tpu.memory_space<vmem>>, vector<4x1xf32>
    %c0_86 = arith.constant 0 : index
    %c0_87 = arith.constant 0 : index
    %228 = vector.load %arg13[%c0_86, %c0_87] : memref<4x1xf32, #tpu.memory_space<vmem>>, vector<4x1xf32>
    %c0_88 = arith.constant 0 : index
    %c0_89 = arith.constant 0 : index
    %229 = vector.load %arg14[%c0_88, %c0_89] : memref<1x4xf32, #tpu.memory_space<vmem>>, vector<1x4xf32>
    %cst_90 = arith.constant dense<0.000000e+00> : vector<16x4xf32>
    %230 = tpu.matmul %225, %226, %cst_90 {dimension_numbers = #tpu.dot_dimension_numbers<[1], [0], [0], [1], [0, 0, 1, 1], [], []>} : vector<16x32xf32>, vector<32x4xf32>, vector<16x4xf32> -> vector<16x4xf32>
    %cst_91 = arith.constant dense<0.000000e+00> : vector<1x16xf32>
    %231 = tpu.matmul %227, %230, %cst_91 {dimension_numbers = #tpu.dot_dimension_numbers<[0], [1], [1], [0], [0, 1, 1, 0], [], []>} : vector<4x1xf32>, vector<16x4xf32>, vector<1x16xf32> -> vector<1x16xf32>
    %cst_92 = arith.constant dense<0.000000e+00> : vector<16x1xf32>
    %232 = tpu.matmul %230, %228, %cst_92 {dimension_numbers = #tpu.dot_dimension_numbers<[1], [0], [0], [1], [0, 0, 1, 1], [], []>} : vector<16x4xf32>, vector<4x1xf32>, vector<16x1xf32> -> vector<16x1xf32>
    %233 = vector.broadcast %232 : vector<16x1xf32> to vector<16x16xf32>
    %234 = vector.broadcast %231 : vector<1x16xf32> to vector<16x16xf32>
    %235 = arith.addf %233, %234 : vector<16x16xf32>
    %cst_93 = arith.constant 0.000000e+00 : f32
    %236 = vector.broadcast %cst_93 : f32 to vector<16x16xf32>
    %237 = arith.cmpf ogt, %235, %236 : vector<16x16xf32>
    %cst_94 = arith.constant 2.000000e-01 : f32
    %238 = vector.broadcast %cst_94 : f32 to vector<16x16xf32>
    %239 = arith.mulf %238, %235 : vector<16x16xf32>
    %240 = arith.select %237, %235, %239 : vector<16x16xi1>, vector<16x16xf32>
    %cst_95 = arith.constant 0.000000e+00 : f32
    %241 = vector.broadcast %cst_95 : f32 to vector<16x16xf32>
    %242 = arith.cmpf ogt, %0, %241 : vector<16x16xf32>
    %cst_96 = arith.constant -1.000000e+30 : f32
    %243 = vector.broadcast %cst_96 : f32 to vector<16x16xf32>
    %244 = arith.select %242, %240, %243 : vector<16x16xi1>, vector<16x16xf32>
    %cst_97 = arith.constant dense<0xFF800000> : vector<16xf32>
    %245 = vector.multi_reduction <maximumf>, %244, %cst_97 [1] : vector<16x16xf32> to vector<16xf32>
    %246 = vector.shape_cast %245 : vector<16xf32> to vector<16x1xf32>
    %247 = vector.broadcast %246 : vector<16x1xf32> to vector<16x16xf32>
    %248 = arith.subf %244, %247 : vector<16x16xf32>
    %249 = math.exp %248 : vector<16x16xf32>
    %cst_98 = arith.constant dense<0.000000e+00> : vector<16xf32>
    %250 = vector.multi_reduction <add>, %249, %cst_98 [1] : vector<16x16xf32> to vector<16xf32>
    %251 = vector.shape_cast %250 : vector<16xf32> to vector<16x1xf32>
    %252 = vector.broadcast %251 : vector<16x1xf32> to vector<16x16xf32>
    %253 = arith.divf %249, %252 : vector<16x16xf32>
    %cst_99 = arith.constant dense<0.000000e+00> : vector<16x4xf32>
    %254 = tpu.matmul %253, %230, %cst_99 {dimension_numbers = #tpu.dot_dimension_numbers<[1], [0], [0], [1], [0, 0, 1, 1], [], []>} : vector<16x16xf32>, vector<16x4xf32>, vector<16x4xf32> -> vector<16x4xf32>
    %255 = vector.broadcast %229 : vector<1x4xf32> to vector<16x4xf32>
    %256 = arith.addf %254, %255 : vector<16x4xf32>
    %c0_100 = arith.constant 0 : index
    %c0_101 = arith.constant 0 : index
    %257 = vector.load %arg2[%c0_100, %c0_101] : memref<3x16xf32, #tpu.memory_space<vmem>>, vector<3x16xf32>
    %cst_102 = arith.constant dense<0.000000e+00> : vector<3x4xf32>
    %258 = tpu.matmul %257, %256, %cst_102 {dimension_numbers = #tpu.dot_dimension_numbers<[1], [0], [0], [1], [0, 0, 1, 1], [], []>} : vector<3x16xf32>, vector<16x4xf32>, vector<3x4xf32> -> vector<3x4xf32>
    %c0_103 = arith.constant 0 : index
    %c0_104 = arith.constant 0 : index
    %259 = vector.load %arg15[%c0_103, %c0_104] : memref<3x4xf32, #tpu.memory_space<vmem>>, vector<3x4xf32>
    tpu.vector_store %arg15[%c0_103, %c0_104], %258 {strides = array<i32>} : memref<3x4xf32, #tpu.memory_space<vmem>>, vector<3x4xf32>,
    return
  }
}

</mosaic_0001>

<bundles_post_ra>
// kernel: tpu_custom_call.1
= control target key start
LH: loop header
LB: loop body
LE: loop exit
PB: predicated region body
PF: predicated region fallthrough
CT: control target
= control target key end

     0   :  { %vm66_vm0 = vcmask 130048   ;;  %s3120_s0 = inlined_call_operand.vmem [shape: f32[16,16], index: 0, kind: input, shape index: {}]   ;;  %s3121_s1 = inlined_call_operand.vmem [shape: f32[16,16], index: 1, kind: input, shape index: {}]   ;;  %s3122_s2 = inlined_call_operand.vmem [shape: f32[3,16], index: 2, kind: input, shape index: {}]   ;;  %s3123_s3 = inlined_call_operand.vmem [shape: f32[16,32], index: 3, kind: input, shape index: {}]   ;;  %s3124_s4 = inlined_call_operand.vmem [shape: f32[32,4], index: 4, kind: input, shape index: {}]   ;;  %s3125_s5 = inlined_call_operand.vmem [shape: f32[32,4], index: 5, kind: input, shape index: {}]   ;;  %s3126_s6 = inlined_call_operand.vmem [shape: f32[1,32], index: 6, kind: input, shape index: {}]   ;;  %s3127_s7 = inlined_call_operand.vmem [shape: f32[32,32], index: 7, kind: input, shape index: {}]   ;;  %s3128_s8 = inlined_call_operand.vmem [shape: f32[32,4], index: 8, kind: input, shape index: {}]   ;;  %s3129_s9 = inlined_call_operand.vmem [shape: f32[32,4], index: 9, kind: input, shape index: {}]   ;;  %s3130_s10 = inlined_call_operand.vmem [shape: f32[1,32], index: 10, kind: input, shape index: {}]   ;;  %s3131_s11 = inlined_call_operand.vmem [shape: f32[32,4], index: 11, kind: input, shape index: {}]   ;;  %s3132_s12 = inlined_call_operand.vmem [shape: f32[4,1], index: 12, kind: input, shape index: {}]   ;;  %s3133_s13 = inlined_call_operand.vmem [shape: f32[4,1], index: 13, kind: input, shape index: {}]   ;;  %s3134_s14 = inlined_call_operand.vmem [shape: f32[1,4], index: 14, kind: input, shape index: {}]   ;;  %s3135_s15 = inlined_call_operand.hbm [shape: f32[3,4], index: 15, kind: output, shape index: {}]  }
   0x1   :  { %v56_v0 = vld [vmem:[%s3123_s3 + $0x8] sm:$0xff]  ;;  %v55_v1 = vld [vmem:[%s3123_s3] sm:$0xff]  ;;  %v64_v5 = vld [vmem:[%s3125_s5 + $0x18] sm:$0xff] }
   0x2   :  { %v53_v2 = vld [vmem:[%s3120_s0] sm:$0xff]  ;;  %2364 = vmatprep.subr.mxu0 %v56_v0  ;;  %v54_v4 = vld [vmem:[%s3120_s0 + $0x8] sm:$0xff] }
   0x3   :  { %2368 = vmatprep.mubr.msk.f32.mxu0 %vm66_vm0, %v53_v2  ;;  %v57_v3 = vld [vmem:[%s3124_s4] sm:$0xff]  ;;  %2365 = vmatpush3.msra.mxu0 %v56_v0  ;;  %v58_v6 = vld [vmem:[%s3124_s4 + $0x8] sm:$0xff] }
   0x4   :  { %148 = vxpose.xlu0.b32.start [1/4] (short) (narrow) %v57_v3, 8  ;;  %2366 = vmatprep.subr.mxu0 %v55_v1 }
   0x5   :  { %20 = vsyncpa [#allocation3], 0  ;;  %2367 = vmatpush3.msra.mxu0 %v55_v1  ;;  %v63_v7 = vld [vmem:[%s3125_s5 + $0x10] sm:$0xff]  ;;  %v60_v9 = vld [vmem:[%s3124_s4 + $0x18] sm:$0xff]  ;;  %v2634_v11 = vmov 0.0   ;;  %vm2635_vm1 = vmmov 0   ;;  %v345_v24 = vlaneseq }
   0x6   :  { %2369 = vmatmul.mubr.msk.f32.vlgmr.msra.gmra.mxu0 %vm66_vm0, %v54_v4  ;;  %2378 = vmatprep.subr.mxu0 %v64_v5  ;;  %v59_v8 = vld [vmem:[%s3124_s4 + $0x10] sm:$0xff]  ;;  %v62_v10 = vld [vmem:[%s3125_s5 + $0x8] sm:$0xff]  ;;  %v61_v12 = vld [vmem:[%s3125_s5] sm:$0xff]  ;;  %v2636_v13 = vmov 0   ;;  %vm180_vm2 = vcmask 261120   ;;  %v2637_v17 = vmov 2  }
   0x7   :  { %2379 = vmatpush3.msra.mxu0 %v64_v5  ;;  %2371 = vmatprep.subr.mxu1 %v2634_v11  ;;  %v2638_v21 = vmov 1   ;;  %v2639_v23 = vmov 3   ;;  %v2794_v25 = vshrl.u32 %v345_v24, 7  ;;  %v2804_v30 = vld [vmem:[%s3121_s1 + $0x8] sm:$0xff]  ;;  %v2828_v55 = vld [vmem:[%s3121_s1] sm:$0xff]  ;;  %s2640_s1 = smov 120  }
   0x8   :  { %149 = vxpose.xlu0.b32.cont [2/4] (short) (narrow) %v58_v6, 8  ;;  %2380 = vmatprep.subr.mxu0 %v63_v7  ;;  %vm358_vm4 = vcmp.gt.f32.partialorder %v2804_v30, 0.0  ;;  %vm357_vm9 = vcmp.gt.f32.partialorder %v2828_v55, 0.0  ;;  %s2641_s27 = smov 112   ;;  %s2642_s28 = smov 104   ;;  %vm881_vm13 = vcmask 64512  }
   0x9   :  { %2381 = vmatpush3.msra.mxu0 %v63_v7  ;;  %2375 = vmatprep.mubr.msk.f32.mxu1 %vm2635_vm1, %v2634_v11  ;;  %v2797_v26 = vsub.s32 0, %v2794_v25  ;;  %v474_v28 = vsub.s32 1, %v2794_v25  ;;  %v605_v44 = vsub.s32 2, %v2794_v25  ;;  %v736_v54 = vsub.s32 3, %v2794_v25  ;;  %s2643_s30 = smov 8   ;;  %s2644_s21 = smov 16  }
   0xa   :  { %2382 = vmatprep.subr.mxu0 %v62_v10  ;;  %2524 = vset.pattern.permute.xlu1 %v2636_v13  ;;  %s2645_s24 = smov 24   ;;  %vm886_vm14 = vcmask 195584   ;;  %s2646_s29 = smov [#allocation2]  }
   0xb   :  { %2383 = vmatpush3.msra.mxu0 %v62_v10  ;;  %s2233_s16 = sshll.u32 %s2646_s29, 4  ;;  %s2234_s16 = int_to_ptr.vmem [resolvable:$true] %s2233_s16 }
   0xc   :  { %150 = vxpose.xlu0.b32.cont [3/4] (short) (narrow) %v59_v8, 8  ;;  %2384 = vmatprep.subr.mxu0 %v61_v12  ;;  %p2617_p1 = scmp.lt.s32.totalorder %s2234_s16, %s2234_s16 }
   0xd   :  { %2385 = vmatpush3.msra.mxu0 %v61_v12 }
  0x10   :  { %151 = vxpose.xlu0.b32.end [4/4] (short) (narrow) %v60_v9, 8 }
  0x39   :  { %2528 = vset.pattern.permute.xlu0 %v2637_v17 }
  0x80   :  { %v164_v16 = vpop.trf.xlu0 }
  0xc6   :  { %v2769_v14 = vpop.f32.mrf.mxu0 }
  0xc7   :  { %2372 = vmatpush3.xpose.msk.msra.mxu1 %vm180_vm2, %v2769_v14 }
  0xc8   :  { %v2773_v15 = vpop.f32.mrf.mxu0  ;;  %2373 = vmatprep.subr.mxu1 %v2634_v11 }
  0xc9   :  { %2386 = vmatprep.mubr.msk.f32.mxu0 %vm180_vm2, %v2773_v15 }
  0xca   :  { %2387 = vmatmul.mubr.msk.f32.vlgmr.msra.gmra.mxu0 %vm180_vm2, %v2769_v14 }
  0xcb   :  { %2374 = vmatpush3.xpose.msk.msra.mxu1 %vm180_vm2, %v2773_v15 }
  0xcc   :  { %2389 = vmatprep.subr.mxu1 %v2769_v14 }
  0xce   :  { %2376 = vmatmul.mubr.msk.f32.vlgmr.msra.gmra.mxu1 %vm180_vm2, %v164_v16 }
  0xcf   :  { %2390 = vmatpush3.msra.mxu1 %v2769_v14 }
  0xd0   :  { %2391 = vmatprep.subr.mxu1 %v2773_v15 }
  0xd1   :  { %2392 = vmatpush3.msra.mxu1 %v2773_v15 }
 0x18a   :  { %v2388_v18 = vpop.f32.mrf.mxu0 }
 0x18b   :  { %342 = vperm.xlu1 %2524, %v2388_v18  }
 0x18c   :  { %v326_v19 = vpop.f32.mrf.mxu0 }
 0x18d   :  { %596 = vperm.xlu0 %2528, %v326_v19  }
 0x18e   :  { %v256_v20 = vpop.f32.mrf.mxu1 }
 0x18f   :  { %2525 = vset.pattern.permute.xlu1 %v2638_v21  ;;  %v348_v27 = vrot.slane %v256_v20, %v2797_v26  ;;  %v475_v32 = vrot.slane %v256_v20, %v474_v28  ;;  %v606_v47 = vrot.slane %v256_v20, %v605_v44  ;;  %v737_v62 = vrot.slane %v256_v20, %v736_v54 }
 0x190   :  { %469 = vperm.xlu1 %2525, %v2388_v18   ;;  %v2377_v22 = vpop.f32.mrf.mxu1 }
 0x194   :  { %2526 = vset.pattern.permute.xlu1 %v2636_v13 }
 0x195   :  { %337 = vperm.xlu1 %2526, %v326_v19  }
 0x199   :  { %2527 = vset.pattern.permute.xlu1 %v2638_v21 }
 0x19a   :  { %465 = vperm.xlu1 %2527, %v326_v19  }
 0x19e   :  { %2529 = vset.pattern.permute.xlu1 %v2637_v17 }
 0x19f   :  { %600 = vperm.xlu1 %2529, %v2388_v18  }
 0x1a3   :  { %2530 = vset.pattern.permute.xlu1 %v2639_v23 }
 0x1a4   :  { %727 = vperm.xlu1 %2530, %v326_v19  }
 0x1a8   :  { %731 = vperm.xlu1 %2530, %v2388_v18  }
 0x1ac   :  { %2531 = vset.pattern.permute.xlu1 %v2636_v13 }
 0x206   :  { %v343_v29 = vpop.permute.xlu1 %342 }
 0x207   :  { %v350_v31 = vadd.f32 %v348_v27, %v343_v29 }
 0x208   :  { %v597_v52 = vpop.permute.xlu0 %596 }
 0x209   :  { %v354_v33 = vmul.f32 0.2, %v350_v31  ;;  %vm352_vm3 = vcmp.gt.f32.partialorder %v350_v31, 0.0  ;;  %v607_v56 = vadd.f32 %v606_v47, %v597_v52 }
 0x20b   :  { %v470_v34 = vpop.permute.xlu1 %469  ;;  %v356_v35 = vsel %vm352_vm3, %v350_v31, %v354_v33  ;;  %v611_v1 = vmul.f32 0.2, %v607_v56  ;;  %vm609_vm10 = vcmp.gt.f32.partialorder %v607_v56, 0.0 }
 0x20c   :  { %v477_v36 = vadd.f32 %v475_v32, %v470_v34  ;;  %v2811_v37 = vsel %vm358_vm4, %v356_v35, -1e+30 }
 0x20d   :  { %v364_v38 = vsel %vm66_vm0, %v2811_v37, -inf  ;;  %v613_v9 = vsel %vm609_vm10, %v607_v56, %v611_v1 }
 0x20e   :  { %v481_v39 = vmul.f32 0.2, %v477_v36  ;;  %365 = vmax.xlane.f32.xlu0 %v364_v38  ;;  %vm479_vm5 = vcmp.gt.f32.partialorder %v477_v36, 0.0  ;;  %v615_v12 = vsel %vm357_vm9, %v613_v9, -1e+30 }
 0x20f   :  { %v617_v19 = vsel %vm66_vm0, %v615_v12, -inf }
 0x210   :  { %v338_v40 = vpop.permute.xlu1 %337  ;;  %v483_v41 = vsel %vm479_vm5, %v477_v36, %v481_v39 }
 0x211   :  { %v2817_v42 = vsel %vm358_vm4, %v483_v41, -1e+30  ;;  %v349_v46 = vadd.f32 %v348_v27, %v338_v40 }
 0x212   :  { %v489_v43 = vsel %vm66_vm0, %v2817_v42, -inf }
 0x213   :  { %490 = vmax.xlane.f32.xlu1 %v489_v43  ;;  %v353_v49 = vmul.f32 0.2, %v349_v46  ;;  %vm351_vm6 = vcmp.gt.f32.partialorder %v349_v46, 0.0 }
 0x215   :  { %v466_v45 = vpop.permute.xlu1 %465  ;;  %v355_v60 = vsel %vm351_vm6, %v349_v46, %v353_v49 }
 0x216   :  { %v476_v50 = vadd.f32 %v475_v32, %v466_v45  ;;  %v359_v0 = vsel %vm357_vm9, %v355_v60, -1e+30 }
 0x217   :  { %v361_v5 = vsel %vm66_vm0, %v359_v0, -inf }
 0x218   :  { %v480_v57 = vmul.f32 0.2, %v476_v50  ;;  %vm478_vm8 = vcmp.gt.f32.partialorder %v476_v50, 0.0 }
 0x21a   :  { %v601_v48 = vpop.permute.xlu1 %600  ;;  %v482_v3 = vsel %vm478_vm8, %v476_v50, %v480_v57 }
 0x21b   :  { %v608_v51 = vadd.f32 %v606_v47, %v601_v48  ;;  %v484_v6 = vsel %vm357_vm9, %v482_v3, -1e+30 }
 0x21c   :  { %v486_v10 = vsel %vm66_vm0, %v484_v6, -inf }
 0x21d   :  { %v612_v53 = vmul.f32 0.2, %v608_v51  ;;  %vm610_vm7 = vcmp.gt.f32.partialorder %v608_v51, 0.0 }
 0x21f   :  { %v728_v58 = vpop.permute.xlu1 %727  ;;  %v614_v59 = vsel %vm610_vm7, %v608_v51, %v612_v53 }
 0x220   :  { %v616_v61 = vsel %vm358_vm4, %v614_v59, -1e+30  ;;  %v738_v2 = vadd.f32 %v737_v62, %v728_v58 }
 0x221   :  { %v620_v63 = vsel %vm66_vm0, %v616_v61, -inf }
 0x222   :  { %621 = vmax.xlane.f32.xlu1 %v620_v63  ;;  %v742_v7 = vmul.f32 0.2, %v738_v2  ;;  %vm740_vm11 = vcmp.gt.f32.partialorder %v738_v2, 0.0 }
 0x223   :  { %v732_v4 = vpop.permute.xlu1 %731 }
 0x224   :  { %510 = vrot.lane.b32.xlu0 %v2769_v14, %s2640_s1  ;;  %v739_v8 = vadd.f32 %v737_v62, %v732_v4  ;;  %v744_v18 = vsel %vm740_vm11, %v738_v2, %v742_v7 }
 0x225   :  { %v746_v20 = vsel %vm357_vm9, %v744_v18, -1e+30 }
 0x226   :  { %362 = vmax.xlane.f32.xlu1 %v361_v5  ;;  %v743_v16 = vmul.f32 0.2, %v739_v8  ;;  %vm741_vm12 = vcmp.gt.f32.partialorder %v739_v8, 0.0  ;;  %v748_v24 = vsel %vm66_vm0, %v746_v20, -inf }
 0x228   :  { %v745_v22 = vsel %vm741_vm12, %v739_v8, %v743_v16  ;;  %vm1939_vm12 = vcmask 1043456  }
 0x229   :  { %v747_v27 = vsel %vm358_vm4, %v745_v22, -1e+30 }
 0x22a   :  { %487 = vmax.xlane.f32.xlu1 %v486_v10  ;;  %v751_v29 = vsel %vm66_vm0, %v747_v27, -inf }
 0x22e   :  { %618 = vmax.xlane.f32.xlu1 %v617_v19 }
 0x232   :  { %749 = vmax.xlane.f32.xlu1 %v748_v24 }
 0x236   :  { %752 = vmax.xlane.f32.xlu1 %v751_v29 }
 0x247   :  { %508 = vrot.lane.b32.xlu1 %v2773_v15, %s2640_s1 }
 0x24b   :  { %641 = vrot.lane.b32.xlu1 %v2769_v14, %s2641_s27 }
 0x24f   :  { %772 = vrot.lane.b32.xlu1 %v2769_v14, %s2642_s28 }
 0x297   :  { %v366_v31 = vpop.xlane.xlu0 %365 }
 0x298   :  { %v368_v32 = vsub.f32 %v2811_v37, %v366_v31 }
 0x29a   :  { %v371_v33 = vmul.f32 1.442695, %v368_v32 }
 0x29b   :  { %v511_v34 = vpop.permute.xlu0 %510 }
 0x29c   :  { %2540 = vpow2.f32 %v371_v33  ;;  %v491_v35 = vpop.xlane.xlu1 %490  ;;  %2396 = vmatprep.subr.mxu0 %v511_v34 }
 0x29d   :  { %v493_v36 = vsub.f32 %v2817_v42, %v491_v35  ;;  %2397 = vmatpush3.msra.mxu0 %v511_v34 }
 0x29f   :  { %v496_v38 = vmul.f32 1.442695, %v493_v36 }
 0x2a1   :  { %2542 = vpow2.f32 %v496_v38 }
 0x2a9   :  { %v2861_v39 = vpop.eup %2540 }
 0x2aa   :  { %v376_v40 = vsel %vm66_vm0, %v2861_v39, 0.0 }
 0x2ab   :  { %v622_v41 = vpop.xlane.xlu1 %621  ;;  %377 = vadd.xlane.f32.xlu1 %v376_v40 }
 0x2ac   :  { %v624_v14 = vsub.f32 %v616_v61, %v622_v41 }
 0x2ae   :  { %v2865_v43 = vpop.eup %2542  ;;  %v627_v37 = vmul.f32 1.442695, %v624_v14 }
 0x2af   :  { %v363_v45 = vpop.xlane.xlu1 %362  ;;  %v501_v46 = vsel %vm66_vm0, %v2865_v43, 0.0 }
 0x2b0   :  { %2544 = vpow2.f32 %v627_v37  ;;  %v367_v42 = vsub.f32 %v359_v0, %v363_v45  ;;  %502 = vadd.xlane.f32.xlu1 %v501_v46 }
 0x2b2   :  { %v369_v47 = vmul.f32 1.442695, %v367_v42 }
 0x2b3   :  { %v488_v48 = vpop.xlane.xlu1 %487 }
 0x2b4   :  { %2546 = vpow2.f32 %v369_v47  ;;  %v492_v49 = vsub.f32 %v484_v6, %v488_v48 }
 0x2b6   :  { %v494_v50 = vmul.f32 1.442695, %v492_v49 }
 0x2b7   :  { %v619_v51 = vpop.xlane.xlu1 %618 }
 0x2b8   :  { %2548 = vpow2.f32 %v494_v50  ;;  %v623_v52 = vsub.f32 %v615_v12, %v619_v51  ;;  %v902_v50 = vld [vmem:[%s3127_s7 + $0x18] sm:$0xff] }
 0x2ba   :  { %v625_v53 = vmul.f32 1.442695, %v623_v52  ;;  %v901_v52 = vld [vmem:[%s3127_s7 + $0x10] sm:$0xff] }
 0x2bb   :  { %v750_v56 = vpop.xlane.xlu1 %749 }
 0x2bc   :  { %2550 = vpow2.f32 %v625_v53  ;;  %v754_v57 = vsub.f32 %v746_v20, %v750_v56 }
 0x2bd   :  { %v2869_v58 = vpop.eup %2544 }
 0x2be   :  { %v756_v59 = vmul.f32 1.442695, %v754_v57  ;;  %v632_v60 = vsel %vm66_vm0, %v2869_v58, 0.0  ;;  %v900_v57 = vld [vmem:[%s3127_s7 + $0x8] sm:$0xff] }
 0x2bf   :  { %633 = vadd.xlane.f32.xlu1 %v632_v60  ;;  %v753_v61 = vpop.xlane.xlu1 %752 }
 0x2c0   :  { %2552 = vpow2.f32 %v756_v59  ;;  %v755_v62 = vsub.f32 %v747_v27, %v753_v61  ;;  %v899_v59 = vld [vmem:[%s3127_s7] sm:$0xff]  ;;  %v910_v61 = vld [vmem:[%s3129_s9 + $0x18] sm:$0xff] }
 0x2c1   :  { %v2547_v63 = vpop.eup %2546 }
 0x2c2   :  { %v758_v0 = vmul.f32 1.442695, %v755_v62  ;;  %v373_v1 = vsel %vm66_vm0, %v2547_v63, 0.0 }
 0x2c3   :  { %374 = vadd.xlane.f32.xlu0 %v373_v1  ;;  %v509_v2 = vpop.permute.xlu1 %508  ;;  %v904_v1 = vld [vmem:[%s3128_s8 + $0x8] sm:$0xff] }
 0x2c4   :  { %2554 = vpow2.f32 %v758_v0  ;;  %2398 = vmatprep.subr.mxu0 %v509_v2  ;;  %v903_v0 = vld [vmem:[%s3128_s8] sm:$0xff] }
 0x2c5   :  { %v2549_v3 = vpop.eup %2548  ;;  %2399 = vmatpush3.msra.mxu0 %v509_v2  ;;  %v905_v2 = vld [vmem:[%s3128_s8 + $0x10] sm:$0xff] }
 0x2c6   :  { %v498_v4 = vsel %vm66_vm0, %v2549_v3, 0.0 }
 0x2c7   :  { %499 = vadd.xlane.f32.xlu0 %v498_v4  ;;  %v642_v5 = vpop.permute.xlu1 %641 }
 0x2c8   :  { %2403 = vmatprep.subr.mxu1 %v642_v5 }
 0x2c9   :  { %v2551_v6 = vpop.eup %2550 }
 0x2ca   :  { %v629_v7 = vsel %vm66_vm0, %v2551_v6, 0.0 }
 0x2cb   :  { %630 = vadd.xlane.f32.xlu0 %v629_v7  ;;  %v773_v8 = vpop.permute.xlu1 %772 }
 0x2cc   :  { %2410 = vmatprep.subr.mxu0 %v773_v8 }
 0x2cd   :  { %v2553_v9 = vpop.eup %2552 }
 0x2ce   :  { %v760_v10 = vsel %vm66_vm0, %v2553_v9, 0.0 }
 0x2cf   :  { %761 = vadd.xlane.f32.xlu0 %v760_v10  ;;  %v2256_v10 = vld [vmem:[%s3126_s6] ss:$0 sm:$0xff] }
 0x2d1   :  { %v2555_v12 = vpop.eup %2554 }
 0x2d2   :  { %v763_v16 = vsel %vm66_vm0, %v2555_v12, 0.0 }
 0x2d3   :  { %764 = vadd.xlane.f32.xlu1 %v763_v16 }
 0x2e4   :  { %770 = vrot.lane.b32.xlu1 %v2773_v15, %s2642_s28 }
 0x2e5   :  { %639 = vrot.lane.b32.xlu0 %v2773_v15, %s2641_s27 }
 0x334   :  { %v378_v18 = vpop.xlane.xlu1 %377 }
 0x335   :  { %2556 = vrcp.f32 %v378_v18 }
 0x339   :  { %v503_v20 = vpop.xlane.xlu1 %502 }
 0x342   :  { %v2557_v31 = vpop.eup %2556 }
 0x343   :  { %v382_v15 = vmul.f32 %v2557_v31, %v2861_v39 }
 0x348   :  { %v634_v24 = vpop.xlane.xlu1 %633 }
 0x34c   :  { %v375_v19 = vpop.xlane.xlu0 %374 }
 0x34d   :  { %2558 = vrcp.f32 %v375_v19 }
 0x34e   :  { %2560 = vrcp.f32 %v503_v20 }
 0x350   :  { %v500_v22 = vpop.xlane.xlu0 %499 }
 0x351   :  { %2562 = vrcp.f32 %v500_v22 }
 0x352   :  { %2564 = vrcp.f32 %v634_v24 }
 0x354   :  { %v631_v27 = vpop.xlane.xlu0 %630 }
 0x355   :  { %2566 = vrcp.f32 %v631_v27 }
 0x358   :  { %v762_v29 = vpop.xlane.xlu0 %761 }
 0x359   :  { %2568 = vrcp.f32 %v762_v29 }
 0x35a   :  { %v2559_v32 = vpop.eup %2558 }
 0x35b   :  { %v380_v33 = vmul.f32 %v2559_v32, %v2547_v63  ;;  %v2561_v35 = vpop.eup %2560  ;;  %v909_v32 = vld [vmem:[%s3129_s9 + $0x10] sm:$0xff] }
 0x35c   :  { %v765_v34 = vpop.xlane.xlu1 %764  ;;  %v640_v38 = vpop.permute.xlu0 %639  ;;  %v507_v41 = vmul.f32 %v2561_v35, %v2865_v43 }
 0x35d   :  { %2570 = vrcp.f32 %v765_v34  ;;  %2393 = vmatprep.mubr.msk.f32.mxu1 %vm66_vm0, %v380_v33  ;;  %v908_v33 = vld [vmem:[%s3129_s9 + $0x8] sm:$0xff]  ;;  %v907_v34 = vld [vmem:[%s3129_s9] sm:$0xff] }
 0x35e   :  { %v2563_v36 = vpop.eup %2562  ;;  %2394 = vmatmul.mubr.msk.f32.vlgmr.msra.gmra.mxu1 %vm66_vm0, %v382_v15 }
 0x35f   :  { %2404 = vmatpush3.msra.mxu1 %v642_v5  ;;  %v505_v40 = vmul.f32 %v2563_v36, %v2549_v3  ;;  %v2565_v14 = vpop.eup %2564  ;;  %v906_v3 = vld [vmem:[%s3128_s8 + $0x18] sm:$0xff] }
 0x360   :  { %2405 = vmatprep.subr.mxu1 %v640_v38  ;;  %v771_v39 = vpop.permute.xlu1 %770  ;;  %v638_v46 = vmul.f32 %v2565_v14, %v2869_v58 }
 0x361   :  { %2406 = vmatpush3.msra.mxu1 %v640_v38  ;;  %2400 = vmatprep.mubr.msk.f32.mxu0 %vm66_vm0, %v505_v40 }
 0x362   :  { %v2567_v37 = vpop.eup %2566  ;;  %2401 = vmatmul.mubr.msk.f32.vlgmr.msra.gmra.mxu0 %vm66_vm0, %v507_v41  ;;  %2417 = vmatprep.subr.mxu1 %v902_v50 }
 0x363   :  { %2411 = vmatpush3.msra.mxu0 %v773_v8  ;;  %v636_v45 = vmul.f32 %v2567_v37, %v2551_v6 }
 0x364   :  { %2412 = vmatprep.subr.mxu0 %v771_v39 }
 0x365   :  { %2413 = vmatpush3.msra.mxu0 %v771_v39  ;;  %2407 = vmatprep.mubr.msk.f32.mxu1 %vm66_vm0, %v636_v45 }
 0x366   :  { %v2569_v42 = vpop.eup %2568  ;;  %2408 = vmatmul.mubr.msk.f32.vlgmr.msra.gmra.mxu1 %vm66_vm0, %v638_v46  ;;  %2428 = vmatprep.subr.mxu0 %v2634_v11 }
 0x367   :  { %v767_v43 = vmul.f32 %v2569_v42, %v2553_v9  ;;  %2418 = vmatpush3.msra.mxu1 %v902_v50 }
 0x368   :  { %2419 = vmatprep.subr.mxu1 %v901_v52 }
 0x369   :  { %2414 = vmatprep.mubr.msk.f32.mxu0 %vm66_vm0, %v767_v43  ;;  %2420 = vmatpush3.msra.mxu1 %v901_v52 }
 0x36a   :  { %v2571_v47 = vpop.eup %2570  ;;  %2421 = vmatprep.subr.mxu1 %v900_v57 }
 0x36b   :  { %v769_v48 = vmul.f32 %v2571_v47, %v2555_v12  ;;  %2422 = vmatpush3.msra.mxu1 %v900_v57 }
 0x36c   :  { %2423 = vmatprep.subr.mxu1 %v899_v59 }
 0x36d   :  { %2415 = vmatmul.mubr.msk.f32.vlgmr.msra.gmra.mxu0 %vm66_vm0, %v769_v48  ;;  %2424 = vmatpush3.msra.mxu1 %v899_v59 }
 0x36e   :  { %2432 = vmatprep.mubr.msk.f32.mxu0 %vm2635_vm1, %v2634_v11  ;;  %2435 = vmatprep.subr.mxu1 %v910_v61 }
 0x41e   :  { %v2395_v49 = vpop.f32.mrf.mxu1 }
 0x420   :  { %v455_v53 = vpop.f32.mrf.mxu1 }
 0x422   :  { %v2402_v51 = vpop.f32.mrf.mxu0 }
 0x423   :  { %861 = vrot.lane.b32.xlu1 %v2402_v51, %s2643_s30 }
 0x424   :  { %v586_v56 = vpop.f32.mrf.mxu0 }
 0x425   :  { %859 = vrot.lane.b32.xlu0 %v586_v56, %s2643_s30 }
 0x426   :  { %v2409_v58 = vpop.f32.mrf.mxu1 }
 0x427   :  { %869 = vrot.lane.b32.xlu1 %v2409_v58, %s2644_s21 }
 0x428   :  { %v717_v60 = vpop.f32.mrf.mxu1 }
 0x429   :  { %867 = vrot.lane.b32.xlu0 %v717_v60, %s2644_s21 }
 0x42d   :  { %v2416_v62 = vpop.f32.mrf.mxu0 }
 0x42e   :  { %877 = vrot.lane.b32.xlu1 %v2416_v62, %s2645_s24 }
 0x42f   :  { %v848_v63 = vpop.f32.mrf.mxu0 }
 0x430   :  { %875 = vrot.lane.b32.xlu0 %v848_v63, %s2645_s24 }
 0x44e   :  { %993 = vxpose.xlu0.b32.start [1/4] (short) (narrow) %v903_v0, 8 }
 0x452   :  { %994 = vxpose.xlu0.b32.cont [2/4] (short) (narrow) %v904_v1, 8 }
 0x456   :  { %995 = vxpose.xlu0.b32.cont [3/4] (short) (narrow) %v905_v2, 8 }
 0x45a   :  { %996 = vxpose.xlu0.b32.end [4/4] (short) (narrow) %v906_v3, 8 }
 0x495   :  { %v862_v4 = vpop.permute.xlu1 %861 }
 0x496   :  { %v883_v8 = vsel %vm881_vm13, %v2395_v49, %v862_v4 }
 0x497   :  { %v860_v5 = vpop.permute.xlu0 %859 }
 0x498   :  { %v882_v16 = vsel %vm881_vm13, %v455_v53, %v860_v5 }
 0x499   :  { %v870_v6 = vpop.permute.xlu1 %869 }
 0x49a   :  { %v885_v9 = vsel %vm66_vm0, %v883_v8, %v870_v6 }
 0x49b   :  { %v868_v7 = vpop.permute.xlu0 %867 }
 0x49c   :  { %v884_v19 = vsel %vm66_vm0, %v882_v16, %v868_v7 }
 0x4a0   :  { %v878_v12 = vpop.permute.xlu1 %877 }
 0x4a1   :  { %v888_v18 = vsel %vm886_vm14, %v885_v9, %v878_v12 }
 0x4a2   :  { %v876_v20 = vpop.permute.xlu0 %875  ;;  %v896_v22 = vadd.f32 %v2256_v10, %v888_v18 }
 0x4a3   :  { %v887_v24 = vsel %vm886_vm14, %v884_v19, %v876_v20 }
 0x4a4   :  { %v895_v27 = vadd.f32 %v2256_v10, %v887_v24  ;;  %v898_v31 = vmax.f32 %v896_v22, 0.0 }
 0x4a6   :  { %v897_v29 = vmax.f32 %v895_v27, 0.0 }
 0x4a8   :  { %2425 = vmatprep.mubr.msk.f32.mxu1 %vm180_vm2, %v897_v29 }
 0x4a9   :  { %2426 = vmatmul.mubr.msk.f32.vlgmr.msra.gmra.mxu1 %vm180_vm2, %v898_v31 }
 0x4aa   :  { %2436 = vmatpush3.msra.mxu1 %v910_v61 }
 0x4ab   :  { %2437 = vmatprep.subr.mxu1 %v909_v32 }
 0x4ac   :  { %2438 = vmatpush3.msra.mxu1 %v909_v32 }
 0x4ad   :  { %2439 = vmatprep.subr.mxu1 %v908_v33 }
 0x4ae   :  { %2440 = vmatpush3.msra.mxu1 %v908_v33 }
 0x4af   :  { %2441 = vmatprep.subr.mxu1 %v907_v34 }
 0x4b0   :  { %2442 = vmatpush3.msra.mxu1 %v907_v34 }
 0x4ca   :  { %v1009_v36 = vpop.trf.xlu0 }
 0x569   :  { %v2949_v15 = vpop.f32.mrf.mxu1 }
 0x56a   :  { %2429 = vmatpush3.xpose.msk.msra.mxu0 %vm180_vm2, %v2949_v15 }
 0x56b   :  { %v2953_v35 = vpop.f32.mrf.mxu1  ;;  %2430 = vmatprep.subr.mxu0 %v2634_v11 }
 0x56c   :  { %2443 = vmatprep.mubr.msk.f32.mxu1 %vm180_vm2, %v2953_v35 }
 0x56d   :  { %2444 = vmatmul.mubr.msk.f32.vlgmr.msra.gmra.mxu1 %vm180_vm2, %v2949_v15 }
 0x56e   :  { %2431 = vmatpush3.xpose.msk.msra.mxu0 %vm180_vm2, %v2953_v35 }
 0x56f   :  { %2446 = vmatprep.subr.mxu0 %v2949_v15 }
 0x571   :  { %2433 = vmatmul.mubr.msk.f32.vlgmr.msra.gmra.mxu0 %vm180_vm2, %v1009_v36 }
 0x572   :  { %2447 = vmatpush3.msra.mxu0 %v2949_v15 }
 0x573   :  { %2448 = vmatprep.subr.mxu0 %v2953_v35 }
 0x574   :  { %2449 = vmatpush3.msra.mxu0 %v2953_v35 }
 0x62d   :  { %v2445_v38 = vpop.f32.mrf.mxu1 }
 0x62e   :  { %1186 = vperm.xlu1 %2531, %v2445_v38  }
 0x62f   :  { %v1170_v14 = vpop.f32.mrf.mxu1 }
 0x631   :  { %v2967_v40 = vpop.f32.mrf.mxu0 }
 0x632   :  { %2532 = vset.pattern.permute.xlu1 %v2638_v21  ;;  %v1192_v37 = vrot.slane %v2967_v40, %v2797_v26  ;;  %v1317_v46 = vrot.slane %v2967_v40, %v474_v28  ;;  %v1448_v48 = vrot.slane %v2967_v40, %v605_v44  ;;  %v1579_v10 = vrot.slane %v2967_v40, %v736_v54 }
 0x633   :  { %1311 = vperm.xlu1 %2532, %v2445_v38   ;;  %v2434_v41 = vpop.f32.mrf.mxu0 }
 0x637   :  { %2533 = vset.pattern.permute.xlu1 %v2637_v17 }
 0x638   :  { %1442 = vperm.xlu1 %2533, %v2445_v38  }
 0x63c   :  { %2534 = vset.pattern.permute.xlu1 %v2636_v13 }
 0x63d   :  { %1181 = vperm.xlu1 %2534, %v1170_v14  }
 0x641   :  { %2535 = vset.pattern.permute.xlu1 %v2638_v21 }
 0x642   :  { %1307 = vperm.xlu1 %2535, %v1170_v14  }
 0x646   :  { %2536 = vset.pattern.permute.xlu1 %v2637_v17 }
 0x647   :  { %1438 = vperm.xlu1 %2536, %v1170_v14  }
 0x64b   :  { %2537 = vset.pattern.permute.xlu1 %v2639_v23 }
 0x64c   :  { %1569 = vperm.xlu1 %2537, %v1170_v14  }
 0x650   :  { %1573 = vperm.xlu1 %2537, %v2445_v38  }
 0x654   :  { %2538 = vset.pattern.permute.xlu1 %v2636_v13 }
 0x6a9   :  { %v1187_v39 = vpop.permute.xlu1 %1186 }
 0x6aa   :  { %v1194_v45 = vadd.f32 %v1192_v37, %v1187_v39 }
 0x6ac   :  { %v1198_v21 = vmul.f32 0.2, %v1194_v45  ;;  %vm1196_vm15 = vcmp.gt.f32.partialorder %v1194_v45, 0.0 }
 0x6ae   :  { %v1312_v42 = vpop.permute.xlu1 %1311  ;;  %v1200_v17 = vsel %vm1196_vm15, %v1194_v45, %v1198_v21 }
 0x6af   :  { %v1319_v43 = vadd.f32 %v1317_v46, %v1312_v42  ;;  %v2983_v23 = vsel %vm358_vm4, %v1200_v17, -1e+30 }
 0x6b0   :  { %v1206_v47 = vsel %vm66_vm0, %v2983_v23, -inf }
 0x6b1   :  { %v1323_v49 = vmul.f32 0.2, %v1319_v43  ;;  %1207 = vmax.xlane.f32.xlu0 %v1206_v47  ;;  %vm1321_vm3 = vcmp.gt.f32.partialorder %v1319_v43, 0.0 }
 0x6b3   :  { %v1443_v28 = vpop.permute.xlu1 %1442  ;;  %v1325_v50 = vsel %vm1321_vm3, %v1319_v43, %v1323_v49 }
 0x6b4   :  { %v1450_v51 = vadd.f32 %v1448_v48, %v1443_v28  ;;  %v1327_v52 = vsel %vm358_vm4, %v1325_v50, -1e+30 }
 0x6b5   :  { %v1331_v53 = vsel %vm66_vm0, %v1327_v52, -inf }
 0x6b6   :  { %v1454_v56 = vmul.f32 0.2, %v1450_v51  ;;  %1332 = vmax.xlane.f32.xlu1 %v1331_v53  ;;  %vm1452_vm5 = vcmp.gt.f32.partialorder %v1450_v51, 0.0 }
 0x6b8   :  { %v1182_v57 = vpop.permute.xlu1 %1181  ;;  %v1456_v58 = vsel %vm1452_vm5, %v1450_v51, %v1454_v56 }
 0x6b9   :  { %v1193_v59 = vadd.f32 %v1192_v37, %v1182_v57  ;;  %v1458_v44 = vsel %vm358_vm4, %v1456_v58, -1e+30 }
 0x6ba   :  { %v1462_v60 = vsel %vm66_vm0, %v1458_v44, -inf }
 0x6bb   :  { %v1197_v61 = vmul.f32 0.2, %v1193_v59  ;;  %1463 = vmax.xlane.f32.xlu1 %v1462_v60  ;;  %vm1195_vm6 = vcmp.gt.f32.partialorder %v1193_v59, 0.0 }
 0x6bd   :  { %v1308_v62 = vpop.permute.xlu1 %1307  ;;  %v1199_v63 = vsel %vm1195_vm6, %v1193_v59, %v1197_v61 }
 0x6be   :  { %v1318_v0 = vadd.f32 %v1317_v46, %v1308_v62  ;;  %v1201_v1 = vsel %vm357_vm9, %v1199_v63, -1e+30 }
 0x6bf   :  { %v1203_v2 = vsel %vm66_vm0, %v1201_v1, -inf }
 0x6c0   :  { %v1322_v3 = vmul.f32 0.2, %v1318_v0  ;;  %1204 = vmax.xlane.f32.xlu1 %v1203_v2  ;;  %vm1320_vm7 = vcmp.gt.f32.partialorder %v1318_v0, 0.0 }
 0x6c2   :  { %v1439_v4 = vpop.permute.xlu1 %1438  ;;  %v1324_v5 = vsel %vm1320_vm7, %v1318_v0, %v1322_v3 }
 0x6c3   :  { %v1449_v6 = vadd.f32 %v1448_v48, %v1439_v4  ;;  %v1326_v7 = vsel %vm357_vm9, %v1324_v5, -1e+30 }
 0x6c4   :  { %v1328_v8 = vsel %vm66_vm0, %v1326_v7, -inf }
 0x6c5   :  { %v1453_v9 = vmul.f32 0.2, %v1449_v6  ;;  %1329 = vmax.xlane.f32.xlu1 %v1328_v8  ;;  %vm1451_vm8 = vcmp.gt.f32.partialorder %v1449_v6, 0.0 }
 0x6c7   :  { %v1570_v12 = vpop.permute.xlu1 %1569  ;;  %v1455_v16 = vsel %vm1451_vm8, %v1449_v6, %v1453_v9 }
 0x6c8   :  { %v1580_v18 = vadd.f32 %v1579_v10, %v1570_v12  ;;  %v1457_v19 = vsel %vm357_vm9, %v1455_v16, -1e+30 }
 0x6c9   :  { %v1459_v20 = vsel %vm66_vm0, %v1457_v19, -inf }
 0x6ca   :  { %v1584_v22 = vmul.f32 0.2, %v1580_v18  ;;  %1460 = vmax.xlane.f32.xlu1 %v1459_v20  ;;  %vm1582_vm10 = vcmp.gt.f32.partialorder %v1580_v18, 0.0 }
 0x6cb   :  { %v1574_v24 = vpop.permute.xlu1 %1573 }
 0x6cc   :  { %v1581_v27 = vadd.f32 %v1579_v10, %v1574_v24  ;;  %v1586_v29 = vsel %vm1582_vm10, %v1580_v18, %v1584_v22 }
 0x6cd   :  { %v1588_v31 = vsel %vm357_vm9, %v1586_v29, -1e+30 }
 0x6ce   :  { %v1585_v25 = vmul.f32 0.2, %v1581_v27  ;;  %v1590_v54 = vsel %vm66_vm0, %v1588_v31, -inf  ;;  %vm1583_vm11 = vcmp.gt.f32.partialorder %v1581_v27, 0.0 }
 0x6cf   :  { %1591 = vmax.xlane.f32.xlu0 %v1590_v54 }
 0x6d0   :  { %v1587_v32 = vsel %vm1583_vm11, %v1581_v27, %v1585_v25 }
 0x6d1   :  { %v1589_v33 = vsel %vm358_vm4, %v1587_v32, -1e+30 }
 0x6d2   :  { %v1593_v34 = vsel %vm66_vm0, %v1589_v33, -inf }
 0x6d3   :  { %1594 = vmax.xlane.f32.xlu1 %v1593_v34 }
 0x6e4   :  { %1350 = vrot.lane.b32.xlu1 %v2953_v35, %s2640_s1 }
 0x6e5   :  { %1352 = vrot.lane.b32.xlu0 %v2949_v15, %s2640_s1 }
 0x6e8   :  { %1483 = vrot.lane.b32.xlu1 %v2949_v15, %s2641_s27 }
 0x6ec   :  { %1614 = vrot.lane.b32.xlu1 %v2949_v15, %s2642_s28 }
 0x73a   :  { %v1208_v36 = vpop.xlane.xlu0 %1207 }
 0x73b   :  { %v1210_v38 = vsub.f32 %v2983_v23, %v1208_v36 }
 0x73d   :  { %v1213_v40 = vmul.f32 1.442695, %v1210_v38 }
 0x73f   :  { %2572 = vpow2.f32 %v1213_v40  ;;  %v1333_v41 = vpop.xlane.xlu1 %1332 }
 0x740   :  { %v1335_v14 = vsub.f32 %v1327_v52, %v1333_v41 }
 0x742   :  { %v1338_v37 = vmul.f32 1.442695, %v1335_v14 }
 0x744   :  { %2574 = vpow2.f32 %v1338_v37  ;;  %v1464_v39 = vpop.xlane.xlu1 %1463 }
 0x745   :  { %v1466_v45 = vsub.f32 %v1458_v44, %v1464_v39 }
 0x747   :  { %v1469_v46 = vmul.f32 1.442695, %v1466_v45 }
 0x749   :  { %2576 = vpow2.f32 %v1469_v46  ;;  %v1205_v21 = vpop.xlane.xlu1 %1204 }
 0x74a   :  { %v1209_v42 = vsub.f32 %v1201_v1, %v1205_v21 }
 0x74c   :  { %v3023_v17 = vpop.eup %2572  ;;  %v1211_v43 = vmul.f32 1.442695, %v1209_v42 }
 0x74d   :  { %v1218_v15 = vsel %vm66_vm0, %v3023_v17, 0.0 }
 0x74e   :  { %2578 = vpow2.f32 %v1211_v43  ;;  %1219 = vadd.xlane.f32.xlu1 %v1218_v15  ;;  %v1330_v23 = vpop.xlane.xlu1 %1329  ;;  %v1742_v43 = vld [vmem:[%s3131_s11 + $0x18] sm:$0xff] }
 0x74f   :  { %v1334_v47 = vsub.f32 %v1326_v7, %v1330_v23  ;;  %v1741_v23 = vld [vmem:[%s3131_s11 + $0x10] sm:$0xff] }
 0x751   :  { %v3027_v48 = vpop.eup %2574  ;;  %v1336_v49 = vmul.f32 1.442695, %v1334_v47 }
 0x752   :  { %v1343_v28 = vsel %vm66_vm0, %v3027_v48, 0.0 }
 0x753   :  { %2580 = vpow2.f32 %v1336_v49  ;;  %1344 = vadd.xlane.f32.xlu1 %v1343_v28  ;;  %v1461_v50 = vpop.xlane.xlu1 %1460  ;;  %v1739_v49 = vld [vmem:[%s3131_s11] sm:$0xff] }
 0x754   :  { %v1465_v51 = vsub.f32 %v1457_v19, %v1461_v50 }
 0x756   :  { %v3031_v52 = vpop.eup %2576  ;;  %v1467_v53 = vmul.f32 1.442695, %v1465_v51 }
 0x757   :  { %v1474_v56 = vsel %vm66_vm0, %v3031_v52, 0.0 }
 0x758   :  { %2582 = vpow2.f32 %v1467_v53  ;;  %v1592_v57 = vpop.xlane.xlu0 %1591  ;;  %1475 = vadd.xlane.f32.xlu1 %v1474_v56  ;;  %v1743_v56 = vld [vmem:[%s3132_s12] sm:$0xf] }
 0x759   :  { %v1596_v58 = vsub.f32 %v1588_v31, %v1592_v57 }
 0x75b   :  { %v2579_v59 = vpop.eup %2578  ;;  %v1598_v44 = vmul.f32 1.442695, %v1596_v58 }
 0x75c   :  { %v1353_v60 = vpop.permute.xlu0 %1352  ;;  %v1595_v61 = vpop.xlane.xlu1 %1594  ;;  %v1215_v62 = vsel %vm66_vm0, %v2579_v59, 0.0 }
 0x75d   :  { %2584 = vpow2.f32 %v1598_v44  ;;  %v1597_v63 = vsub.f32 %v1589_v33, %v1595_v61  ;;  %2453 = vmatprep.subr.mxu0 %v1353_v60  ;;  %1216 = vadd.xlane.f32.xlu0 %v1215_v62  ;;  %v2272_v62 = vld [vmem:[%s3130_s10] ss:$0 sm:$0xff] }
 0x75f   :  { %v1600_v0 = vmul.f32 1.442695, %v1597_v63 }
 0x760   :  { %v2581_v1 = vpop.eup %2580  ;;  %v1351_v2 = vpop.permute.xlu1 %1350 }
 0x761   :  { %2586 = vpow2.f32 %v1600_v0  ;;  %v1340_v3 = vsel %vm66_vm0, %v2581_v1, 0.0 }
 0x762   :  { %1341 = vadd.xlane.f32.xlu0 %v1340_v3 }
 0x764   :  { %v1484_v4 = vpop.permute.xlu1 %1483 }
 0x765   :  { %v2583_v5 = vpop.eup %2582  ;;  %2460 = vmatprep.subr.mxu1 %v1484_v4 }
 0x766   :  { %2461 = vmatpush3.msra.mxu1 %v1484_v4  ;;  %v1471_v6 = vsel %vm66_vm0, %v2583_v5, 0.0 }
 0x767   :  { %1472 = vadd.xlane.f32.xlu0 %v1471_v6 }
 0x768   :  { %v1615_v12 = vpop.permute.xlu1 %1614 }
 0x76a   :  { %v2585_v7 = vpop.eup %2584 }
 0x76b   :  { %v1602_v8 = vsel %vm66_vm0, %v2585_v7, 0.0 }
 0x76c   :  { %1603 = vadd.xlane.f32.xlu0 %v1602_v8  ;;  %v1744_v8 = vld [vmem:[%s3133_s13] sm:$0xf] }
 0x76e   :  { %v2587_v9 = vpop.eup %2586 }
 0x76f   :  { %v1605_v10 = vsel %vm66_vm0, %v2587_v9, 0.0 }
 0x770   :  { %1606 = vadd.xlane.f32.xlu1 %v1605_v10 }
 0x781   :  { %1612 = vrot.lane.b32.xlu1 %v2953_v35, %s2642_s28 }
 0x782   :  { %1481 = vrot.lane.b32.xlu0 %v2953_v35, %s2641_s27 }
 0x7d7   :  { %v1220_v16 = vpop.xlane.xlu1 %1219 }
 0x7d8   :  { %2588 = vrcp.f32 %v1220_v16 }
 0x7dc   :  { %v1345_v19 = vpop.xlane.xlu1 %1344 }
 0x7e1   :  { %v1476_v22 = vpop.xlane.xlu1 %1475 }
 0x7e5   :  { %v2589_v27 = vpop.eup %2588 }
 0x7e6   :  { %v1217_v18 = vpop.xlane.xlu0 %1216  ;;  %v1224_v35 = vmul.f32 %v2589_v27, %v3023_v17 }
 0x7e7   :  { %2590 = vrcp.f32 %v1217_v18 }
 0x7e8   :  { %2592 = vrcp.f32 %v1345_v19 }
 0x7eb   :  { %v1342_v20 = vpop.xlane.xlu0 %1341 }
 0x7ec   :  { %2594 = vrcp.f32 %v1342_v20 }
 0x7ed   :  { %2596 = vrcp.f32 %v1476_v22 }
 0x7f0   :  { %v1473_v24 = vpop.xlane.xlu0 %1472 }
 0x7f1   :  { %2598 = vrcp.f32 %v1473_v24 }
 0x7f4   :  { %v2591_v29 = vpop.eup %2590 }
 0x7f5   :  { %v1604_v31 = vpop.xlane.xlu0 %1603  ;;  %v1222_v25 = vmul.f32 %v2591_v29, %v2579_v59  ;;  %v2593_v54 = vpop.eup %2592 }
 0x7f6   :  { %2600 = vrcp.f32 %v1604_v31  ;;  %v1349_v38 = vmul.f32 %v2593_v54, %v3027_v48  ;;  %v1740_v48 = vld [vmem:[%s3131_s11 + $0x8] sm:$0xff] }
 0x7f7   :  { %2450 = vmatprep.mubr.msk.f32.mxu0 %vm66_vm0, %v1222_v25 }
 0x7f8   :  { %2451 = vmatmul.mubr.msk.f32.vlgmr.msra.gmra.mxu0 %vm66_vm0, %v1224_v35 }
 0x7f9   :  { %v2595_v32 = vpop.eup %2594  ;;  %2454 = vmatpush3.msra.mxu0 %v1353_v60  ;;  %v1482_v33 = vpop.permute.xlu0 %1481 }
 0x7fa   :  { %v1607_v34 = vpop.xlane.xlu1 %1606  ;;  %2455 = vmatprep.subr.mxu0 %v1351_v2  ;;  %2462 = vmatprep.subr.mxu1 %v1482_v33  ;;  %v1347_v36 = vmul.f32 %v2595_v32, %v2581_v1  ;;  %v2597_v40 = vpop.eup %2596 }
 0x7fb   :  { %2602 = vrcp.f32 %v1607_v34  ;;  %2456 = vmatpush3.msra.mxu0 %v1351_v2  ;;  %2463 = vmatpush3.msra.mxu1 %v1482_v33  ;;  %v1480_v39 = vmul.f32 %v2597_v40, %v3031_v52 }
 0x7fc   :  { %2467 = vmatprep.subr.mxu0 %v1615_v12  ;;  %2457 = vmatprep.mubr.msk.f32.mxu0 %vm66_vm0, %v1347_v36 }
 0x7fd   :  { %2458 = vmatmul.mubr.msk.f32.vlgmr.msra.gmra.mxu0 %vm66_vm0, %v1349_v38  ;;  %2474 = vmatprep.subr.mxu1 %v1742_v43 }
 0x7fe   :  { %v1613_v41 = vpop.permute.xlu1 %1612  ;;  %v2599_v14 = vpop.eup %2598  ;;  %2468 = vmatpush3.msra.mxu0 %v1615_v12 }
 0x7ff   :  { %2469 = vmatprep.subr.mxu0 %v1613_v41  ;;  %v1478_v37 = vmul.f32 %v2599_v14, %v2583_v5 }
 0x800   :  { %2470 = vmatpush3.msra.mxu0 %v1613_v41 }
 0x801   :  { %2464 = vmatprep.mubr.msk.f32.mxu1 %vm66_vm0, %v1478_v37  ;;  %2485 = vmatprep.subr.mxu0 %v2634_v11 }
 0x802   :  { %2465 = vmatmul.mubr.msk.f32.vlgmr.msra.gmra.mxu1 %vm66_vm0, %v1480_v39 }
 0x803   :  { %v2601_v45 = vpop.eup %2600  ;;  %2475 = vmatpush3.msra.mxu1 %v1742_v43 }
 0x804   :  { %v1609_v46 = vmul.f32 %v2601_v45, %v2585_v7  ;;  %2476 = vmatprep.subr.mxu1 %v1741_v23 }
 0x805   :  { %2477 = vmatpush3.msra.mxu1 %v1741_v23 }
 0x806   :  { %2471 = vmatprep.mubr.msk.f32.mxu0 %vm66_vm0, %v1609_v46  ;;  %2478 = vmatprep.subr.mxu1 %v1740_v48 }
 0x807   :  { %2479 = vmatpush3.msra.mxu1 %v1740_v48 }
 0x808   :  { %v2603_v21 = vpop.eup %2602  ;;  %2480 = vmatprep.subr.mxu1 %v1739_v49 }
 0x809   :  { %v1611_v42 = vmul.f32 %v2603_v21, %v2587_v9  ;;  %2481 = vmatpush3.msra.mxu1 %v1739_v49 }
 0x80a   :  { %2492 = vmatprep.subr.msk.mxu1 %vm1939_vm12, %v1744_v8 }
 0x80b   :  { %2472 = vmatmul.mubr.msk.f32.vlgmr.msra.gmra.mxu0 %vm66_vm0, %v1611_v42 }
 0x80c   :  { %2489 = vmatprep.mubr.msk.f32.mxu0 %vm2635_vm1, %v2634_v11 }
 0x8b8   :  { %v2452_v17 = vpop.f32.mrf.mxu0 }
 0x8ba   :  { %v1297_v15 = vpop.f32.mrf.mxu0 }
 0x8bd   :  { %v2459_v28 = vpop.f32.mrf.mxu0 }
 0x8bf   :  { %v1428_v51 = vpop.f32.mrf.mxu0 }
 0x8c2   :  { %v2466_v47 = vpop.f32.mrf.mxu1 }
 0x8c3   :  { %1711 = vrot.lane.b32.xlu1 %v2466_v47, %s2644_s21  ;;  %v2281_v47 = vld [vmem:[%s3134_s14] ss:$0 sm:$0xff]  ;;  %s2612_s14 = scalar_lea.vmem %s2234_s16, 64 }
 0x8c4   :  { %v1559_v50 = vpop.f32.mrf.mxu1  ;;  %p2613_p0 = scmp.ne.s32.totalorder %s2234_s16, %s2612_s14  ;;  %p2618_p2 = scmp.lt.s32.totalorder %s2612_s14, %s2612_s14 }
 0x8c5   :  { %1709 = vrot.lane.b32.xlu0 %v1559_v50, %s2644_s21 }
 0x8c6   :  { %p2619_p3 = por %p2618_p2, %p2617_p1 }
 0x8c7   :  { %1703 = vrot.lane.b32.xlu1 %v2459_v28, %s2643_s30 }
 0x8c8   :  { %p2620_p4 = pnand %p2619_p3, %p2613_p0 }
 0x8c9   :  { %1701 = vrot.lane.b32.xlu0 %v1428_v51, %s2643_s30  ;;  %v2151_v51 = vld [vmem:[%s3122_s2] sm:$0x7] }
 0x8cb   :  { %v2473_v52 = vpop.f32.mrf.mxu0 }
 0x8cc   :  { %1719 = vrot.lane.b32.xlu1 %v2473_v52, %s2645_s24 }
 0x8cd   :  { %v1690_v53 = vpop.f32.mrf.mxu0 }
 0x8ce   :  { %1717 = vrot.lane.b32.xlu0 %v1690_v53, %s2645_s24 }
 0x8ec   :  { %1827 = vxpose.xlu0.b32.start.end [1/1] (short) (narrow) %v1743_v56, 8 }
 0x915   :  { %2539 = vset.pattern.permute.xlu0 %v2636_v13 }
 0x935   :  { %v1712_v57 = vpop.permute.xlu1 %1711 }
 0x937   :  { %v1710_v58 = vpop.permute.xlu0 %1709 }
 0x939   :  { %v1704_v59 = vpop.permute.xlu1 %1703 }
 0x93a   :  { %v1724_v44 = vsel %vm881_vm13, %v2452_v17, %v1704_v59 }
 0x93b   :  { %v1702_v60 = vpop.permute.xlu0 %1701  ;;  %v1726_v63 = vsel %vm66_vm0, %v1724_v44, %v1712_v57 }
 0x93c   :  { %v1723_v61 = vsel %vm881_vm13, %v1297_v15, %v1702_v60  ;;  %vm1859_vm13 = vcmask 31744  }
 0x93d   :  { %v1725_v2 = vsel %vm66_vm0, %v1723_v61, %v1710_v58 }
 0x93e   :  { %v1720_v0 = vpop.permute.xlu1 %1719 }
 0x93f   :  { %v1728_v1 = vsel %vm886_vm14, %v1726_v63, %v1720_v0 }
 0x940   :  { %v1718_v13 = vpop.permute.xlu0 %1717  ;;  %v1736_v3 = vadd.f32 %v2272_v62, %v1728_v1 }
 0x941   :  { %v1727_v4 = vsel %vm886_vm14, %v1725_v2, %v1718_v13 }
 0x942   :  { %v1735_v5 = vadd.f32 %v2272_v62, %v1727_v4  ;;  %v1738_v7 = vmax.f32 %v1736_v3, 0.0 }
 0x944   :  { %v1737_v6 = vmax.f32 %v1735_v5, 0.0 }
 0x946   :  { %2482 = vmatprep.mubr.msk.f32.mxu1 %vm180_vm2, %v1737_v6 }
 0x947   :  { %2483 = vmatmul.mubr.msk.f32.vlgmr.msra.gmra.mxu1 %vm180_vm2, %v1738_v7 }
 0x948   :  { %2493 = vmatpush3.msk.msra.mxu1 %vm1939_vm12, %v1744_v8 }
 0x949   :  { %2504 = vmatprep.subr.mxu1 %v2634_v11 }
 0x968   :  { %v1843_v12 = vpop.trf.xlu0 }
 0xa07   :  { %v2484_v9 = vpop.f32.mrf.mxu1 }
 0xa08   :  { %2486 = vmatpush3.xpose.msk.msra.mxu0 %vm1859_vm13, %v2484_v9 }
 0xa09   :  { %v1818_v10 = vpop.f32.mrf.mxu1  ;;  %2487 = vmatprep.subr.mxu0 %v2634_v11 }
 0xa0a   :  { %2494 = vmatprep.mubr.msk.f32.mxu1 %vm1859_vm13, %v1818_v10 }
 0xa0b   :  { %2495 = vmatmul.mubr.msk.f32.vlgmr.msra.gmra.mxu1 %vm1859_vm13, %v2484_v9 }
 0xa0c   :  { %2488 = vmatpush3.xpose.msk.msra.mxu0 %vm1859_vm13, %v1818_v10  ;;  %2508 = vmatprep.mubr.msk.f32.mxu1 %vm2635_vm1, %v2634_v11 }
 0xa0d   :  { %2497 = vmatprep.subr.mxu0 %v2484_v9 }
 0xa0f   :  { %2490 = vmatmul.mubr.msk.f32.vlgmr.msra.gmra.mxu0 %vm1859_vm13, %v1843_v12 }
 0xa10   :  { %2498 = vmatpush3.msra.mxu0 %v2484_v9 }
 0xa11   :  { %2499 = vmatprep.subr.mxu0 %v1818_v10 }
 0xa12   :  { %2500 = vmatpush3.msra.mxu0 %v1818_v10 }
 0xacb   :  { %v2496_v16 = vpop.f32.mrf.mxu1 }
 0xacd   :  { %v2009_v18 = vpop.f32.mrf.mxu1 }
 0xace   :  { %2020 = vperm.xlu1 %2538, %v2009_v18  }
 0xacf   :  { %v1935_v19 = vpop.f32.mrf.mxu0 }
 0xad0   :  { %v2031_v22 = vrot.slane %v1935_v19, %v2797_v26 }
 0xad1   :  { %v2491_v20 = vpop.f32.mrf.mxu0 }
 0xad2   :  { %2025 = vperm.xlu1 %2538, %v2496_v16  }
 0xb49   :  { %v2021_v24 = vpop.permute.xlu1 %2020 }
 0xb4a   :  { %v2032_v27 = vadd.f32 %v2031_v22, %v2021_v24 }
 0xb4c   :  { %vm2034_vm2 = vcmp.gt.f32.partialorder %v2032_v27, 0.0  ;;  %v2036_v29 = vmul.f32 0.2, %v2032_v27 }
 0xb4d   :  { %v2026_v31 = vpop.permute.xlu1 %2025 }
 0xb4e   :  { %v2033_v25 = vadd.f32 %v2031_v22, %v2026_v31  ;;  %v2038_v35 = vsel %vm2034_vm2, %v2032_v27, %v2036_v29 }
 0xb4f   :  { %v2040_v54 = vsel %vm357_vm9, %v2038_v35, -1e+30 }
 0xb50   :  { %v2037_v32 = vmul.f32 0.2, %v2033_v25  ;;  %v2042_v33 = vsel %vm66_vm0, %v2040_v54, -inf  ;;  %vm2035_vm1 = vcmp.gt.f32.partialorder %v2033_v25, 0.0 }
 0xb51   :  { %2043 = vmax.xlane.f32.xlu1 %v2042_v33 }
 0xb52   :  { %v2039_v34 = vsel %vm2035_vm1, %v2033_v25, %v2037_v32 }
 0xb53   :  { %v2041_v36 = vsel %vm358_vm4, %v2039_v34, -1e+30  ;;  %vm2225_vm4 = vcmask 26624  }
 0xb54   :  { %v2045_v26 = vsel %vm66_vm0, %v2041_v36, -inf }
 0xb55   :  { %2046 = vmax.xlane.f32.xlu0 %v2045_v26 }
 0xbda   :  { %v2044_v38 = vpop.xlane.xlu1 %2043 }
 0xbdb   :  { %v2048_v40 = vsub.f32 %v2040_v54, %v2044_v38 }
 0xbdd   :  { %v2050_v41 = vmul.f32 1.442695, %v2048_v40 }
 0xbde   :  { %v2047_v14 = vpop.xlane.xlu0 %2046 }
 0xbdf   :  { %2604 = vpow2.f32 %v2050_v41  ;;  %v2049_v37 = vsub.f32 %v2041_v36, %v2047_v14 }
 0xbe1   :  { %v2052_v55 = vmul.f32 1.442695, %v2049_v37 }
 0xbe3   :  { %2606 = vpow2.f32 %v2052_v55 }
 0xbec   :  { %v2605_v39 = vpop.eup %2604 }
 0xbed   :  { %v2054_v45 = vsel %vm66_vm0, %v2605_v39, 0.0 }
 0xbee   :  { %2055 = vadd.xlane.f32.xlu1 %v2054_v45 }
 0xbf0   :  { %v2607_v46 = vpop.eup %2606 }
 0xbf1   :  { %v2057_v21 = vsel %vm66_vm0, %v2607_v46, 0.0 }
 0xbf2   :  { %2058 = vadd.xlane.f32.xlu1 %v2057_v21 }
 0xc77   :  { %v2056_v30 = vpop.xlane.xlu1 %2055 }
 0xc78   :  { %2608 = vrcp.f32 %v2056_v30 }
 0xc7b   :  { %v2059_v42 = vpop.xlane.xlu1 %2058 }
 0xc7c   :  { %2610 = vrcp.f32 %v2059_v42 }
 0xc85   :  { %v2609_v17 = vpop.eup %2608 }
 0xc86   :  { %v2061_v43 = vmul.f32 %v2609_v17, %v2605_v39 }
 0xc88   :  { %2501 = vmatprep.mubr.msk.f32.mxu0 %vm66_vm0, %v2061_v43 }
 0xc89   :  { %v2611_v15 = vpop.eup %2610 }
 0xc8a   :  { %v2063_v23 = vmul.f32 %v2611_v15, %v2607_v46 }
 0xc8c   :  { %2502 = vmatmul.mubr.msk.f32.vlgmr.msra.gmra.mxu0 %vm66_vm0, %v2063_v23 }
 0xd4c   :  { %v2503_v48 = vpop.f32.mrf.mxu0 }
 0xd4d   :  { %v2148_v49 = vadd.f32 %v2503_v48, %v2281_v47 }
 0xd4e   :  { %v2142_v28 = vpop.f32.mrf.mxu0 }
 0xd4f   :  { %v2143_v50 = vadd.f32 %v2281_v47, %v2142_v28  ;;  %2505 = vmatpush3.msra.mxu1 %v2148_v49 }
 0xd50   :  { %2506 = vmatprep.subr.mxu1 %v2634_v11 }
 0xd51   :  { %2507 = vmatpush3.msra.mxu1 %v2143_v50 }
 0xd52   :  { %2509 = vmatmul.mubr.msk.f32.vlgmr.msra.gmra.mxu1 %vm66_vm0, %v2151_v51 }
 0xe12   :  { %v2221_v52 = vpop.f32.mrf.mxu1 }
 0xe13   :  { %2226 = vst.msk [vmem:[#allocation2] sm:$0x7] %vm2225_vm4, %v2221_v52 }
 0xe14   :  { %v2510_v53 = vpop.f32.mrf.mxu1 }
 0xe15   :  { %2623 = shalt.err (!%p2620_p4)
}
 0xe16   :  { %2236 = dma.vmem_to_hbm [thread:$0]  %s2234_s16, 64, %s3135_s15, [#allocation3]  }
 0xe17   :  { %2632 = dma.done.wait [#allocation3], 64  }
 0xe18   :  { %2633 = vsyncadd [#allocation3], 4294967232 }
 0xe19   :  { %2240 = vsyncpa [#allocation3], 1 }

</bundles_post_ra>
